<compile_context>
chip_gen: v5e
topology: v5e:2x2
jax: 0.10.0
libtpu: 0.0.40
codegen_flags: <defaults>
</compile_context>

<pallas_src>
import functools

import jax
import jax.numpy as jnp
from jax import lax
from jax.experimental import pallas as pl
from jax.experimental.pallas import tpu as pltpu


def _dwpw_kernel(x_ref, dw_ref, w2_ref, b_ref, o_ref, *scratch, n_blk, O, C, R,
                 K, H, W, Hout, Wout, stride, padding, dilation):
    """Fused depthwise->pointwise conv for one block of n_blk batch elements.

    The lane axis of every activation holds the folded (rank, batch-in-block,
    channel) index:  lane L = r*(n_blk*C) + j*C + c,   L in [0, R*n_blk*C).

    x_ref:   (H, W, L)              input plane(s), rank+batch folded on lanes
    dw_ref:  (K*K, L)               depthwise weights, tap-major lane vectors
    w2_ref:  (n_blk*O, L)           block-diagonal pointwise weights (mm dtype)
    b_ref:   (n_blk*O, 1)           pointwise bias (f32)
    o_ref:   (n_blk, O, Hout*Wout)  output block (lane-dense last dim)
    scratch: optional (Hp, Wp, L) VMEM pad buffer (only when padding > 0)
    """
    L = R * n_blk * C
    hw = Hout * Wout
    p = padding

    # ---- stage 0: zero-padded plane; only the 4 border strips are zeroed ----
    if p > 0:
        xpad_ref = scratch[0]
        Wp = W + 2 * p
        xpad_ref[:p, :, :] = jnp.zeros((p, Wp, L), xpad_ref.dtype)
        xpad_ref[p + H:, :, :] = jnp.zeros((p, Wp, L), xpad_ref.dtype)
        xpad_ref[p:p + H, :p, :] = jnp.zeros((H, p, L), xpad_ref.dtype)
        xpad_ref[p:p + H, p + W:, :] = jnp.zeros((H, p, L), xpad_ref.dtype)
        xpad_ref[p:p + H, p:p + W, :] = x_ref[...]
        src = xpad_ref
    else:
        src = x_ref                     # no padding: slice the input directly

    def win(k0, size):
        start = k0 * dilation           # static; H stride on the outer dim,
        if stride == 1:                 # W stride on sublanes, lanes always
            return pl.ds(start, size)   # unit-stride.
        return pl.ds(start, size, stride=stride)

    # ---- stage 1: depthwise conv on the VPU (f32), single accumulator ------
    acc = jnp.zeros((Hout, Wout, L), jnp.float32)
    for kh in range(K):
        for kw in range(K):
            xs = src[win(kh, Hout), win(kw, Wout), :]          # (Hout, Wout, L)
            acc = acc + xs * dw_ref[kh * K + kw, :][None, None, :]

    # ---- stage 2: ONE pointwise matmul on the MXU (bf16 ops, f32 acc) ------
    mid = acc.reshape(hw, L).astype(w2_ref.dtype)              # leading merge
    out = lax.dot_general(w2_ref[...], mid, (((1,), (1,)), ((), ())),
                          preferred_element_type=jnp.float32)  # (n_blk*O, hw)
    out = out + b_ref[...]
    for j in range(n_blk):
        o_ref[j] = out[j * O:(j + 1) * O, :].astype(o_ref.dtype)


def dwpw_conv2d(x, dw_w, pw_w, pw_b, *, stride=1, padding=0, dilation=1,
                mm_dtype=jnp.bfloat16, max_batch_block=8):
    """x: (N, C, H, W); dw_w: (C, R, K, K); pw_w: (O, C*R); pw_b: (O,).

    Returns (N, O, Hout, Wout), matching DWPW_Conv2d.forward (zeros padding,
    pointwise groups=1).  mm_dtype is the MXU operand dtype (bf16 default,
    f32 accumulation; pass jnp.float32 for bit-tighter results).
    """
    N, C, H, W = x.shape
    _, R, K, _ = dw_w.shape
    O = pw_w.shape[0]
    p = padding
    Hp, Wp = H + 2 * p, W + 2 * p
    eff = dilation * (K - 1) + 1
    Hout = (Hp - eff) // stride + 1
    Wout = (Wp - eff) // stride + 1
    hw = Hout * Wout

    # Batch-block size: largest divisor of N <= max_batch_block.
    n_blk = 1
    for d in range(1, min(N, max_batch_block) + 1):
        if N % d == 0:
            n_blk = d
    NB = N // n_blk
    BC = n_blk * C          # (batch-in-block, channel) fold
    L = R * BC              # full lane fold: (rank, batch-in-block, channel)

    # ---- one-time host-side layout / weight prep (tiny) --------------------
    # input -> (NB, H, W, n_blk*C), then replicate R times along lanes so the
    # kernel needs no lane-direction concat/tile (lane L = r*BC + j*C + c).
    x_f = (x.reshape(NB, n_blk, C, H, W)
            .transpose(0, 3, 4, 1, 2)
            .reshape(NB, H, W, BC))
    if R > 1:
        x_f = jnp.tile(x_f, (1, 1, 1, R))                       # (NB,H,W,L)
    # depthwise weights -> per-tap lane vectors (K*K, L)
    dw_t = jnp.transpose(dw_w, (2, 3, 1, 0)).reshape(K * K, R, 1, C)
    dw_f = jnp.broadcast_to(dw_t, (K * K, R, n_blk, C)).reshape(K * K, L)
    dw_f = dw_f.astype(jnp.float32)
    # pointwise: depthwise output channel index is c*R + r -> (O, R, C), then
    # block-diagonal over the batch fold so the whole block is ONE matmul.
    w2_3 = pw_w.reshape(O, C, R).transpose(0, 2, 1)              # (O, R, C)
    eye = jnp.eye(n_blk, dtype=pw_w.dtype)
    w2_big = (jnp.einsum('ij,orc->iorjc', eye, w2_3)
                 .reshape(n_blk * O, L).astype(mm_dtype))
    b_big = jnp.tile(pw_b.astype(jnp.float32), (n_blk,)).reshape(n_blk * O, 1)

    kernel = functools.partial(
        _dwpw_kernel, n_blk=n_blk, O=O, C=C, R=R, K=K, H=H, W=W,
        Hout=Hout, Wout=Wout, stride=stride, padding=padding,
        dilation=dilation)

    scratch_shapes = ([pltpu.VMEM((Hp, Wp, L), jnp.float32)]
                      if padding > 0 else [])

    # Advisory cost estimate + explicit VMEM budget (v7x only has 64 MiB).
    flops = int(2 * N * hw * R * C * (K * K + O))
    bytes_accessed = int(x_f.size * 4 + dw_f.size * 4
                         + w2_big.size * jnp.dtype(mm_dtype).itemsize
                         + N * O * hw * jnp.dtype(x.dtype).itemsize)
    need = 4 * (2 * H * W * L + 2 * n_blk * O * hw + Hp * Wp * L
                + 2 * hw * L + 2 * K * K * L + 3 * n_blk * O * (L + 1 + hw))
    vmem_limit = int(min(64 * 1024 * 1024, max(32 * 1024 * 1024, 2 * need)))

    out = pl.pallas_call(
        kernel,
        out_shape=jax.ShapeDtypeStruct((N, O, hw), x.dtype),
        grid=(NB,),
        in_specs=[
            pl.BlockSpec((None, H, W, L), lambda nb: (nb, 0, 0, 0)),
            pl.BlockSpec((K * K, L), lambda nb: (0, 0)),
            pl.BlockSpec((n_blk * O, L), lambda nb: (0, 0)),
            pl.BlockSpec((n_blk * O, 1), lambda nb: (0, 0)),
        ],
        out_specs=pl.BlockSpec((n_blk, O, hw), lambda nb: (nb, 0, 0)),
        scratch_shapes=scratch_shapes,
        compiler_params=pltpu.CompilerParams(
            dimension_semantics=("parallel",),
            vmem_limit_bytes=vmem_limit),
        cost_estimate=pl.CostEstimate(flops=flops, transcendentals=0,
                                      bytes_accessed=bytes_accessed),
    )(x_f, dw_f, w2_big, b_big)

    # (N, O, Hout*Wout) -> (N, O, Hout, Wout): contiguous reshape, no transpose
    return out.reshape(N, O, Hout, Wout)


def _ref(x, dw_w, pw_w, pw_b, *, stride, padding, dilation):
    """Pure-JAX reference matching torch.nn.Conv2d semantics."""
    C, R, K, _ = dw_w.shape
    O = pw_w.shape[0]
    w1 = dw_w.reshape(C * R, 1, K, K)
    mid = lax.conv_general_dilated(
        x, w1, window_strides=(stride, stride),
        padding=[(padding, padding), (padding, padding)],
        rhs_dilation=(dilation, dilation),
        dimension_numbers=("NCHW", "OIHW", "NCHW"),
        feature_group_count=C)
    w2 = pw_w.reshape(O, C * R, 1, 1)
    out = lax.conv_general_dilated(
        mid, w2, window_strides=(1, 1), padding=[(0, 0), (0, 0)],
        dimension_numbers=("NCHW", "OIHW", "NCHW"))
    return out + pw_b[None, :, None, None]


if __name__ == "__main__":
    def run_case(key, *, N, C, H, W, O, K, R, stride, padding, dilation,
                 mm_dtype=jnp.float32, atol=1e-4, rtol=1e-4):
        k1, k2, k3, k4 = jax.random.split(key, 4)
        x = jax.random.normal(k1, (N, C, H, W), jnp.float32)
        # Deterministic "Conv2d-like" uniform init (PyTorch fan-in bounds).
        b_dw = 1.0 / (1 * K * K) ** 0.5
        dw_w = jax.random.uniform(k2, (C, R, K, K), jnp.float32, -b_dw, b_dw)
        b_pw = 1.0 / (C * R) ** 0.5
        pw_w = jax.random.uniform(k3, (O, C * R), jnp.float32, -b_pw, b_pw)
        pw_b = jax.random.uniform(k4, (O,), jnp.float32, -b_pw, b_pw)

        out = dwpw_conv2d(x, dw_w, pw_w, pw_b, stride=stride, padding=padding,
                          dilation=dilation, mm_dtype=mm_dtype)
        out = jax.block_until_ready(out)
        ref = _ref(x, dw_w, pw_w, pw_b, stride=stride, padding=padding,
                   dilation=dilation)
        assert out.shape == ref.shape, (out.shape, ref.shape)
        err = float(jnp.max(jnp.abs(out - ref)))
        assert jnp.allclose(out, ref, atol=atol, rtol=rtol), err

    key = jax.random.PRNGKey(0)
    k1, k2, k3, k4 = jax.random.split(key, 4)

    # Base config implied by the module (in=4, out=8, 3x3, stride=1, pad=1,
    # R=1) -- f32 MXU operands for a tight correctness check.
    run_case(k1, N=2, C=4, H=16, W=16, O=8, K=3, R=1,
             stride=1, padding=1, dilation=1, mm_dtype=jnp.float32)
    # Strided / dilated / decoupling_rank > 1.
    run_case(k2, N=2, C=4, H=16, W=16, O=8, K=3, R=2,
             stride=2, padding=2, dilation=2, mm_dtype=jnp.float32)
    # No padding, non-square spatial, odd channel counts, N=1.
    run_case(k3, N=1, C=3, H=12, W=20, O=6, K=3, R=1,
             stride=1, padding=0, dilation=1, mm_dtype=jnp.float32)
    # Default path: bf16 MXU operands (f32 accumulation) -- looser tolerance.
    run_case(k4, N=2, C=4, H=16, W=16, O=8, K=3, R=1,
             stride=1, padding=1, dilation=1,
             mm_dtype=jnp.bfloat16, atol=5e-2, rtol=5e-2)

    print("KERNEL_OK")
</pallas_src>

<mosaic_0001>
module attributes {stable_mosaic.version = 11 : i64} {
  func.func @_dwpw_kernel(%arg0: i32, %arg1: memref<1x16x16x8xf32, #tpu.memory_space<vmem>>, %arg2: memref<9x8xf32, #tpu.memory_space<vmem>>, %arg3: memref<16x8xf32, #tpu.memory_space<vmem>>, %arg4: memref<16x1xf32, #tpu.memory_space<vmem>>, %arg5: memref<2x8x256xf32, #tpu.memory_space<vmem>>, %arg6: memref<18x18x8xf32, #tpu.memory_space<vmem>>) attributes {dimension_semantics = [#tpu.dimension_semantics<parallel>], iteration_bounds = array<i64: 1>, scalar_prefetch = 0 : i64, scratch_operands = 1 : i64, tpu.core_type = #tpu.core_type<tc>, window_params = [{transform_indices = @transform_0, window_bounds = array<i64: 1, 16, 16, 8>}, {pipeline_mode = #tpu.pipeline_mode<synchronous>, transform_indices = @transform_1, window_bounds = array<i64: 9, 8>}, {pipeline_mode = #tpu.pipeline_mode<synchronous>, transform_indices = @transform_2, window_bounds = array<i64: 16, 8>}, {pipeline_mode = #tpu.pipeline_mode<synchronous>, transform_indices = @transform_3, window_bounds = array<i64: 16, 1>}, {transform_indices = @transform_4, window_bounds = array<i64: 2, 8, 256>}]} {
    %cst = arith.constant 0.000000e+00 : f32
    %0 = vector.broadcast %cst : f32 to vector<1x18x8xf32>
    %c0 = arith.constant 0 : index
    %c0_0 = arith.constant 0 : index
    %c0_1 = arith.constant 0 : index
    %1 = vector.load %arg6[%c0, %c0_0, %c0_1] : memref<18x18x8xf32, #tpu.memory_space<vmem>>, vector<1x18x8xf32>
    tpu.vector_store %arg6[%c0, %c0_0, %c0_1], %0 {strides = array<i32>} : memref<18x18x8xf32, #tpu.memory_space<vmem>>, vector<1x18x8xf32>,
    %cst_2 = arith.constant 0.000000e+00 : f32
    %2 = vector.broadcast %cst_2 : f32 to vector<1x18x8xf32>
    %c17 = arith.constant 17 : index
    %c0_3 = arith.constant 0 : index
    %c0_4 = arith.constant 0 : index
    %3 = vector.load %arg6[%c17, %c0_3, %c0_4] : memref<18x18x8xf32, #tpu.memory_space<vmem>>, vector<1x18x8xf32>
    tpu.vector_store %arg6[%c17, %c0_3, %c0_4], %2 {strides = array<i32>} : memref<18x18x8xf32, #tpu.memory_space<vmem>>, vector<1x18x8xf32>,
    %cst_5 = arith.constant 0.000000e+00 : f32
    %4 = vector.broadcast %cst_5 : f32 to vector<16x1x8xf32>
    %c1 = arith.constant 1 : index
    %c0_6 = arith.constant 0 : index
    %c0_7 = arith.constant 0 : index
    %5 = vector.load %arg6[%c1, %c0_6, %c0_7] : memref<18x18x8xf32, #tpu.memory_space<vmem>>, vector<16x1x8xf32>
    tpu.vector_store %arg6[%c1, %c0_6, %c0_7], %4 {strides = array<i32>} : memref<18x18x8xf32, #tpu.memory_space<vmem>>, vector<16x1x8xf32>,
    %cst_8 = arith.constant 0.000000e+00 : f32
    %6 = vector.broadcast %cst_8 : f32 to vector<16x1x8xf32>
    %c1_9 = arith.constant 1 : index
    %c17_10 = arith.constant 17 : index
    %c0_11 = arith.constant 0 : index
    %7 = vector.load %arg6[%c1_9, %c17_10, %c0_11] : memref<18x18x8xf32, #tpu.memory_space<vmem>>, vector<16x1x8xf32>
    tpu.vector_store %arg6[%c1_9, %c17_10, %c0_11], %6 {strides = array<i32>} : memref<18x18x8xf32, #tpu.memory_space<vmem>>, vector<16x1x8xf32>,
    %c0_12 = arith.constant 0 : index
    %c0_13 = arith.constant 0 : index
    %c0_14 = arith.constant 0 : index
    %c0_15 = arith.constant 0 : index
    %8 = vector.load %arg1[%c0_12, %c0_13, %c0_14, %c0_15] : memref<1x16x16x8xf32, #tpu.memory_space<vmem>>, vector<1x16x16x8xf32>
    %9 = vector.shape_cast %8 : vector<1x16x16x8xf32> to vector<16x16x8xf32>
    %c1_16 = arith.constant 1 : index
    %c1_17 = arith.constant 1 : index
    %c0_18 = arith.constant 0 : index
    %10 = vector.load %arg6[%c1_16, %c1_17, %c0_18] : memref<18x18x8xf32, #tpu.memory_space<vmem>>, vector<16x16x8xf32>
    tpu.vector_store %arg6[%c1_16, %c1_17, %c0_18], %9 {strides = array<i32>} : memref<18x18x8xf32, #tpu.memory_space<vmem>>, vector<16x16x8xf32>,
    %cst_19 = arith.constant 0.000000e+00 : f32
    %11 = vector.broadcast %cst_19 : f32 to vector<16x16x8xf32>
    %c0_20 = arith.constant 0 : index
    %c0_21 = arith.constant 0 : index
    %c0_22 = arith.constant 0 : index
    %12 = vector.load %arg6[%c0_20, %c0_21, %c0_22] : memref<18x18x8xf32, #tpu.memory_space<vmem>>, vector<16x16x8xf32>
    %c0_23 = arith.constant 0 : index
    %c0_24 = arith.constant 0 : index
    %13 = vector.load %arg2[%c0_23, %c0_24] : memref<9x8xf32, #tpu.memory_space<vmem>>, vector<1x8xf32>
    %14 = vector.shape_cast %13 : vector<1x8xf32> to vector<8xf32>
    %15 = vector.shape_cast %14 : vector<8xf32> to vector<1x1x8xf32>
    %16 = vector.broadcast %15 : vector<1x1x8xf32> to vector<16x16x8xf32>
    %17 = arith.mulf %12, %16 : vector<16x16x8xf32>
    %18 = arith.addf %11, %17 : vector<16x16x8xf32>
    %c0_25 = arith.constant 0 : index
    %c1_26 = arith.constant 1 : index
    %c0_27 = arith.constant 0 : index
    %19 = vector.load %arg6[%c0_25, %c1_26, %c0_27] : memref<18x18x8xf32, #tpu.memory_space<vmem>>, vector<16x16x8xf32>
    %c1_28 = arith.constant 1 : index
    %c0_29 = arith.constant 0 : index
    %20 = vector.load %arg2[%c1_28, %c0_29] : memref<9x8xf32, #tpu.memory_space<vmem>>, vector<1x8xf32>
    %21 = vector.shape_cast %20 : vector<1x8xf32> to vector<8xf32>
    %22 = vector.shape_cast %21 : vector<8xf32> to vector<1x1x8xf32>
    %23 = vector.broadcast %22 : vector<1x1x8xf32> to vector<16x16x8xf32>
    %24 = arith.mulf %19, %23 : vector<16x16x8xf32>
    %25 = arith.addf %18, %24 : vector<16x16x8xf32>
    %c0_30 = arith.constant 0 : index
    %c2 = arith.constant 2 : index
    %c0_31 = arith.constant 0 : index
    %26 = vector.load %arg6[%c0_30, %c2, %c0_31] : memref<18x18x8xf32, #tpu.memory_space<vmem>>, vector<16x16x8xf32>
    %c2_32 = arith.constant 2 : index
    %c0_33 = arith.constant 0 : index
    %27 = vector.load %arg2[%c2_32, %c0_33] : memref<9x8xf32, #tpu.memory_space<vmem>>, vector<1x8xf32>
    %28 = vector.shape_cast %27 : vector<1x8xf32> to vector<8xf32>
    %29 = vector.shape_cast %28 : vector<8xf32> to vector<1x1x8xf32>
    %30 = vector.broadcast %29 : vector<1x1x8xf32> to vector<16x16x8xf32>
    %31 = arith.mulf %26, %30 : vector<16x16x8xf32>
    %32 = arith.addf %25, %31 : vector<16x16x8xf32>
    %c1_34 = arith.constant 1 : index
    %c0_35 = arith.constant 0 : index
    %c0_36 = arith.constant 0 : index
    %33 = vector.load %arg6[%c1_34, %c0_35, %c0_36] : memref<18x18x8xf32, #tpu.memory_space<vmem>>, vector<16x16x8xf32>
    %c3 = arith.constant 3 : index
    %c0_37 = arith.constant 0 : index
    %34 = vector.load %arg2[%c3, %c0_37] : memref<9x8xf32, #tpu.memory_space<vmem>>, vector<1x8xf32>
    %35 = vector.shape_cast %34 : vector<1x8xf32> to vector<8xf32>
    %36 = vector.shape_cast %35 : vector<8xf32> to vector<1x1x8xf32>
    %37 = vector.broadcast %36 : vector<1x1x8xf32> to vector<16x16x8xf32>
    %38 = arith.mulf %33, %37 : vector<16x16x8xf32>
    %39 = arith.addf %32, %38 : vector<16x16x8xf32>
    %c1_38 = arith.constant 1 : index
    %c1_39 = arith.constant 1 : index
    %c0_40 = arith.constant 0 : index
    %40 = vector.load %arg6[%c1_38, %c1_39, %c0_40] : memref<18x18x8xf32, #tpu.memory_space<vmem>>, vector<16x16x8xf32>
    %c4 = arith.constant 4 : index
    %c0_41 = arith.constant 0 : index
    %41 = vector.load %arg2[%c4, %c0_41] : memref<9x8xf32, #tpu.memory_space<vmem>>, vector<1x8xf32>
    %42 = vector.shape_cast %41 : vector<1x8xf32> to vector<8xf32>
    %43 = vector.shape_cast %42 : vector<8xf32> to vector<1x1x8xf32>
    %44 = vector.broadcast %43 : vector<1x1x8xf32> to vector<16x16x8xf32>
    %45 = arith.mulf %40, %44 : vector<16x16x8xf32>
    %46 = arith.addf %39, %45 : vector<16x16x8xf32>
    %c1_42 = arith.constant 1 : index
    %c2_43 = arith.constant 2 : index
    %c0_44 = arith.constant 0 : index
    %47 = vector.load %arg6[%c1_42, %c2_43, %c0_44] : memref<18x18x8xf32, #tpu.memory_space<vmem>>, vector<16x16x8xf32>
    %c5 = arith.constant 5 : index
    %c0_45 = arith.constant 0 : index
    %48 = vector.load %arg2[%c5, %c0_45] : memref<9x8xf32, #tpu.memory_space<vmem>>, vector<1x8xf32>
    %49 = vector.shape_cast %48 : vector<1x8xf32> to vector<8xf32>
    %50 = vector.shape_cast %49 : vector<8xf32> to vector<1x1x8xf32>
    %51 = vector.broadcast %50 : vector<1x1x8xf32> to vector<16x16x8xf32>
    %52 = arith.mulf %47, %51 : vector<16x16x8xf32>
    %53 = arith.addf %46, %52 : vector<16x16x8xf32>
    %c2_46 = arith.constant 2 : index
    %c0_47 = arith.constant 0 : index
    %c0_48 = arith.constant 0 : index
    %54 = vector.load %arg6[%c2_46, %c0_47, %c0_48] : memref<18x18x8xf32, #tpu.memory_space<vmem>>, vector<16x16x8xf32>
    %c6 = arith.constant 6 : index
    %c0_49 = arith.constant 0 : index
    %55 = vector.load %arg2[%c6, %c0_49] : memref<9x8xf32, #tpu.memory_space<vmem>>, vector<1x8xf32>
    %56 = vector.shape_cast %55 : vector<1x8xf32> to vector<8xf32>
    %57 = vector.shape_cast %56 : vector<8xf32> to vector<1x1x8xf32>
    %58 = vector.broadcast %57 : vector<1x1x8xf32> to vector<16x16x8xf32>
    %59 = arith.mulf %54, %58 : vector<16x16x8xf32>
    %60 = arith.addf %53, %59 : vector<16x16x8xf32>
    %c2_50 = arith.constant 2 : index
    %c1_51 = arith.constant 1 : index
    %c0_52 = arith.constant 0 : index
    %61 = vector.load %arg6[%c2_50, %c1_51, %c0_52] : memref<18x18x8xf32, #tpu.memory_space<vmem>>, vector<16x16x8xf32>
    %c7 = arith.constant 7 : index
    %c0_53 = arith.constant 0 : index
    %62 = vector.load %arg2[%c7, %c0_53] : memref<9x8xf32, #tpu.memory_space<vmem>>, vector<1x8xf32>
    %63 = vector.shape_cast %62 : vector<1x8xf32> to vector<8xf32>
    %64 = vector.shape_cast %63 : vector<8xf32> to vector<1x1x8xf32>
    %65 = vector.broadcast %64 : vector<1x1x8xf32> to vector<16x16x8xf32>
    %66 = arith.mulf %61, %65 : vector<16x16x8xf32>
    %67 = arith.addf %60, %66 : vector<16x16x8xf32>
    %c2_54 = arith.constant 2 : index
    %c2_55 = arith.constant 2 : index
    %c0_56 = arith.constant 0 : index
    %68 = vector.load %arg6[%c2_54, %c2_55, %c0_56] : memref<18x18x8xf32, #tpu.memory_space<vmem>>, vector<16x16x8xf32>
    %c8 = arith.constant 8 : index
    %c0_57 = arith.constant 0 : index
    %69 = vector.load %arg2[%c8, %c0_57] : memref<9x8xf32, #tpu.memory_space<vmem>>, vector<1x8xf32>
    %70 = vector.shape_cast %69 : vector<1x8xf32> to vector<8xf32>
    %71 = vector.shape_cast %70 : vector<8xf32> to vector<1x1x8xf32>
    %72 = vector.broadcast %71 : vector<1x1x8xf32> to vector<16x16x8xf32>
    %73 = arith.mulf %68, %72 : vector<16x16x8xf32>
    %74 = arith.addf %67, %73 : vector<16x16x8xf32>
    %75 = vector.shape_cast %74 : vector<16x16x8xf32> to vector<256x8xf32>
    %c0_58 = arith.constant 0 : index
    %c0_59 = arith.constant 0 : index
    %76 = vector.load %arg3[%c0_58, %c0_59] : memref<16x8xf32, #tpu.memory_space<vmem>>, vector<16x8xf32>
    %cst_60 = arith.constant dense<0.000000e+00> : vector<16x256xf32>
    %77 = tpu.matmul %76, %75, %cst_60 {dimension_numbers = #tpu.dot_dimension_numbers<[1], [1], [0], [0], [0, 0, 1, 0], [], []>} : vector<16x8xf32>, vector<256x8xf32>, vector<16x256xf32> -> vector<16x256xf32>
    %c0_61 = arith.constant 0 : index
    %c0_62 = arith.constant 0 : index
    %78 = vector.load %arg4[%c0_61, %c0_62] : memref<16x1xf32, #tpu.memory_space<vmem>>, vector<16x1xf32>
    %79 = vector.broadcast %78 : vector<16x1xf32> to vector<16x256xf32>
    %80 = arith.addf %77, %79 : vector<16x256xf32>
    %81 = vector.extract_strided_slice %80 {offsets = [0, 0], sizes = [8, 256], strides = [1, 1]} : vector<16x256xf32> to vector<8x256xf32>
    %c0_63 = arith.constant 0 : index
    %c0_64 = arith.constant 0 : index
    %c0_65 = arith.constant 0 : index
    %82 = vector.load %arg5[%c0_63, %c0_64, %c0_65] : memref<2x8x256xf32, #tpu.memory_space<vmem>>, vector<1x8x256xf32>
    %83 = vector.shape_cast %82 : vector<1x8x256xf32> to vector<8x256xf32>
    %84 = vector.shape_cast %81 : vector<8x256xf32> to vector<1x8x256xf32>
    tpu.vector_store %arg5[%c0_63, %c0_64, %c0_65], %84 {strides = array<i32>} : memref<2x8x256xf32, #tpu.memory_space<vmem>>, vector<1x8x256xf32>,
    %85 = vector.extract_strided_slice %80 {offsets = [8, 0], sizes = [8, 256], strides = [1, 1]} : vector<16x256xf32> to vector<8x256xf32>
    %c1_66 = arith.constant 1 : index
    %c0_67 = arith.constant 0 : index
    %c0_68 = arith.constant 0 : index
    %86 = vector.load %arg5[%c1_66, %c0_67, %c0_68] : memref<2x8x256xf32, #tpu.memory_space<vmem>>, vector<1x8x256xf32>
    %87 = vector.shape_cast %86 : vector<1x8x256xf32> to vector<8x256xf32>
    %88 = vector.shape_cast %85 : vector<8x256xf32> to vector<1x8x256xf32>
    tpu.vector_store %arg5[%c1_66, %c0_67, %c0_68], %88 {strides = array<i32>} : memref<2x8x256xf32, #tpu.memory_space<vmem>>, vector<1x8x256xf32>,
    return
  }
  func.func @transform_0(%arg0: i32) -> (i32, i32, i32, i32) {
    %c0_i32 = arith.constant 0 : i32
    %c0_i32_0 = arith.constant 0 : i32
    %c0_i32_1 = arith.constant 0 : i32
    %c0_i32_2 = arith.constant 0 : i32
    return %arg0, %c0_i32, %c0_i32_0, %c0_i32_1 : i32, i32, i32, i32
  }
  func.func @transform_1(%arg0: i32) -> (i32, i32) {
    %c0_i32 = arith.constant 0 : i32
    %c0_i32_0 = arith.constant 0 : i32
    %c0_i32_1 = arith.constant 0 : i32
    return %c0_i32, %c0_i32_0 : i32, i32
  }
  func.func @transform_2(%arg0: i32) -> (i32, i32) {
    %c0_i32 = arith.constant 0 : i32
    %c0_i32_0 = arith.constant 0 : i32
    %c0_i32_1 = arith.constant 0 : i32
    return %c0_i32, %c0_i32_0 : i32, i32
  }
  func.func @transform_3(%arg0: i32) -> (i32, i32) {
    %c0_i32 = arith.constant 0 : i32
    %c0_i32_0 = arith.constant 0 : i32
    %c0_i32_1 = arith.constant 0 : i32
    return %c0_i32, %c0_i32_0 : i32, i32
  }
  func.func @transform_4(%arg0: i32) -> (i32, i32, i32) {
    %c0_i32 = arith.constant 0 : i32
    %c0_i32_0 = arith.constant 0 : i32
    %c0_i32_1 = arith.constant 0 : i32
    return %arg0, %c0_i32, %c0_i32_0 : i32, i32, i32
  }
}

</mosaic_0001>

<bundles_post_ra>
// kernel: tpu_custom_call.1
= control target key start
LH: loop header
LB: loop body
LE: loop exit
PB: predicated region body
PF: predicated region fallthrough
CT: control target
= control target key end

     0   :  { %vm28_vm0 = vcmask 57344   ;;  %vm18_vm1 = vcmask 64512   ;;  %v1311_v0 = vmov 0.0   ;;  %s2523_s0 = inlined_call_operand.vmem [shape: f32[1,16,16,8], index: 0, kind: input, shape index: {}]   ;;  %s2524_s1 = inlined_call_operand.vmem [shape: f32[9,8], index: 1, kind: input, shape index: {}]   ;;  %s2525_s2 = inlined_call_operand.vmem [shape: f32[16,8], index: 2, kind: input, shape index: {}]   ;;  %s2526_s3 = inlined_call_operand.vmem [shape: f32[16,1], index: 3, kind: input, shape index: {}]   ;;  %s2527_s4 = inlined_call_operand.hbm [shape: f32[2,8,256], index: 4, kind: output, shape index: {}]  }
   0x1   :  { %51 = vst.msk [vmem:[#allocation2 + $0xb9] sm:$0x1] %vm28_vm0, %v1311_v0  ;;  %v73_v1 = vld [vmem:[%s2523_s0 + $0x60] sm:$0xff]  ;;  %v74_v2 = vld [vmem:[%s2523_s0 + $0x68] sm:$0xff]  ;;  %v75_v3 = vld [vmem:[%s2523_s0 + $0x70] sm:$0xff] }
   0x2   :  { %52 = vst.msk [vmem:[#allocation2 + $0xd1] sm:$0x1] %vm28_vm0, %v1311_v0  ;;  %v76_v4 = vld [vmem:[%s2523_s0 + $0x78] sm:$0xff]  ;;  %v77_v5 = vld [vmem:[%s2523_s0 + $0x80] sm:$0xff]  ;;  %v78_v6 = vld [vmem:[%s2523_s0 + $0x88] sm:$0xff] }
   0x3   :  { %53 = vst.msk [vmem:[#allocation2 + $0xe9] sm:$0x1] %vm28_vm0, %v1311_v0  ;;  %v1372_v7 = vld [vmem:[%s2524_s1] ss:$0 sm:$0xff]  ;;  %v1378_v8 = vld [vmem:[%s2524_s1 + $0x1] ss:$0 sm:$0xff] }
   0x4   :  { %105 = vst.msk [vmem:[#allocation2 + $0xa9] sm:$0xff] %vm18_vm1, %v73_v1  ;;  %v1384_v9 = vld [vmem:[%s2524_s1 + $0x2] ss:$0 sm:$0xff]  ;;  %v1391_v10 = vld [vmem:[%s2524_s1 + $0x3] ss:$0 sm:$0xff] }
   0x5   :  { %106 = vst.msk [vmem:[#allocation2 + $0xb1] sm:$0xff] %vm18_vm1, %v74_v2 }
   0x6   :  { %107 = vst.msk [vmem:[#allocation2 + $0xc1] sm:$0xff] %vm18_vm1, %v75_v3 }
   0x7   :  { %108 = vst.msk [vmem:[#allocation2 + $0xc9] sm:$0xff] %vm18_vm1, %v76_v4 }
   0x8   :  { %109 = vst.msk [vmem:[#allocation2 + $0xd9] sm:$0xff] %vm18_vm1, %v77_v5 }
   0x9   :  { %110 = vst.msk [vmem:[#allocation2 + $0xe1] sm:$0xff] %vm18_vm1, %v78_v6 }
   0xa   :  { %19 = vst.msk [vmem:[#allocation2] sm:$0xff] %vm18_vm1, %v1311_v0 }
   0xb   :  { %20 = vst.msk [vmem:[#allocation2 + $0x8] sm:$0xff] %vm18_vm1, %v1311_v0 }
   0xc   :  { %9 = vsyncpa [#allocation4], 0  ;;  %v1395_v11 = vld [vmem:[#allocation2 + $0xb0] sm:$0xff]  ;;  %24 = vst.msk [vmem:[#allocation2 + $0x198] sm:$0xff] %vm18_vm1, %v1311_v0  ;;  %v1412_v17 = vld [vmem:[%s2524_s1 + $0x4] ss:$0 sm:$0xff] }
   0xd   :  { %2551 = vst [vmem:[#allocation6_spill] sm:$0xff] %v1395_v11  ;;  %v1397_v12 = vld [vmem:[#allocation2 + $0xb1] sm:$0xff]  ;;  %v174_v14 = vmul.f32 %v1372_v7, %v1395_v11  ;;  %v1427_v22 = vld [vmem:[%s2524_s1 + $0x5] ss:$0 sm:$0xff]  ;;  %v1440_v26 = vld [vmem:[%s2524_s1 + $0x6] ss:$0 sm:$0xff] }
   0xe   :  { %2552 = vst [vmem:[#allocation7_spill] sm:$0xff] %v1397_v12  ;;  %v1399_v13 = vld [vmem:[#allocation2 + $0xb2] sm:$0xff]  ;;  %v272_v15 = vmul.f32 %v1378_v8, %v1397_v12  ;;  %v1416_v18 = vld [vmem:[#allocation2 + $0xc8] sm:$0xff]  ;;  %v1451_v30 = vld [vmem:[%s2524_s1 + $0x7] ss:$0 sm:$0xff]  ;;  %vm21_vm2 = vcmask 58368  }
   0xf   :  { %2553 = vst [vmem:[#allocation8_spill] sm:$0xff] %v1399_v13  ;;  %v370_v16 = vmul.f32 %v1384_v9, %v1399_v13  ;;  %v1418_v19 = vld [vmem:[#allocation2 + $0xc9] sm:$0xff]  ;;  %v468_v21 = vmul.f32 %v1391_v10, %v1416_v18  ;;  %v1461_v34 = vld [vmem:[%s2524_s1 + $0x8] ss:$0 sm:$0xff]  ;;  %v826_v60 = vld [vmem:[#allocation2 + $0xd9] sm:$0xff]  ;;  %s1314_s19 = smov 256  }
  0x10   :  { %25 = vst.msk [vmem:[#allocation2 + $0x1a0] sm:$0xff] %vm18_vm1, %v1311_v0  ;;  %v304_v20 = vadd.f32 %v272_v15, %v174_v14  ;;  %v1431_v23 = vld [vmem:[#allocation2 + $0xca] sm:$0xff]  ;;  %v566_v25 = vmul.f32 %v1412_v17, %v1418_v19  ;;  %v729_v27 = vld [vmem:[#allocation2 + $0xe0] sm:$0xff]  ;;  %v860_v62 = vmul.f32 %v1451_v30, %v826_v60  ;;  %v92_v15 = vld [vmem:[%s2523_s0 + $0xf8] sm:$0xff]  ;;  %s1315_s20 = smov 16  }
  0x11   :  { %29 = vst.msk [vmem:[#allocation2 + $0x18] sm:$0x1] %vm28_vm0, %v1311_v0  ;;  %v664_v29 = vmul.f32 %v1427_v22, %v1431_v23  ;;  %v827_v31 = vld [vmem:[#allocation2 + $0xe1] sm:$0xff]  ;;  %v763_v33 = vmul.f32 %v1440_v26, %v729_v27  ;;  %v1475_v40 = vld [vmem:[#allocation2 + $0xa9] sm:$0xff] }
  0x12   :  { %30 = vst.msk [vmem:[#allocation2 + $0x30] sm:$0x1] %vm28_vm0, %v1311_v0  ;;  %v402_v24 = vadd.f32 %v370_v16, %v304_v20  ;;  %v925_v35 = vld [vmem:[#allocation2 + $0xe2] sm:$0xff]  ;;  %v861_v37 = vmul.f32 %v1451_v30, %v827_v31  ;;  %v271_v41 = vmul.f32 %v1378_v8, %v1475_v40  ;;  %v1485_v44 = vld [vmem:[#allocation2 + $0xaa] sm:$0xff]  ;;  %v924_v63 = vld [vmem:[#allocation2 + $0xda] sm:$0xff] }
  0x13   :  { %31 = vst.msk [vmem:[#allocation2 + $0x48] sm:$0x1] %vm28_vm0, %v1311_v0  ;;  %v959_v39 = vmul.f32 %v1461_v34, %v925_v35  ;;  %v369_v46 = vmul.f32 %v1384_v9, %v1485_v44  ;;  %v1505_v51 = vld [vmem:[#allocation2 + $0xc1] sm:$0xff]  ;;  %v958_v2 = vmul.f32 %v1461_v34, %v924_v63  ;;  %v91_v6 = vld [vmem:[%s2523_s0 + $0xf0] sm:$0xff]  ;;  %v744_v20 = vld [vmem:[#allocation2 + $0x198] sm:$0xff]  ;;  %v1587_v35 = vmul.f32 %v1427_v22, %v1399_v13 }
  0x14   :  { %32 = vst.msk [vmem:[#allocation2 + $0x60] sm:$0x1] %vm28_vm0, %v1311_v0  ;;  %v500_v28 = vadd.f32 %v468_v21, %v402_v24  ;;  %v565_v53 = vmul.f32 %v1412_v17, %v1505_v51  ;;  %v1513_v54 = vld [vmem:[#allocation2 + $0xc2] sm:$0xff]  ;;  %v71_v21 = vld [vmem:[%s2523_s0 + $0x50] sm:$0xff]  ;;  %v1575_v31 = vmul.f32 %v1440_v26, %v744_v20 }
  0x15   :  { %33 = vst.msk [vmem:[#allocation2 + $0x78] sm:$0x1] %vm28_vm0, %v1311_v0  ;;  %v663_v56 = vmul.f32 %v1427_v22, %v1513_v54  ;;  %v89_v3 = vld [vmem:[%s2523_s0 + $0xe0] sm:$0xff]  ;;  %v90_v5 = vld [vmem:[%s2523_s0 + $0xe8] sm:$0xff] }
  0x16   :  { %34 = vst.msk [vmem:[#allocation2 + $0x90] sm:$0x1] %vm28_vm0, %v1311_v0  ;;  %v598_v32 = vadd.f32 %v566_v25, %v500_v28  ;;  %v72_v25 = vld [vmem:[%s2523_s0 + $0x58] sm:$0xff]  ;;  %v1569_v28 = vmul.f32 %v1391_v10, %v1395_v11 }
  0x17   :  { %35 = vst.msk [vmem:[#allocation2 + $0xa8] sm:$0x1] %vm28_vm0, %v1311_v0  ;;  %v745_v16 = vld [vmem:[#allocation2 + $0x1a0] sm:$0xff] }
  0x18   :  { %36 = vst.msk [vmem:[#allocation2 + $0xc0] sm:$0x1] %vm28_vm0, %v1311_v0  ;;  %v696_v36 = vadd.f32 %v664_v29, %v598_v32  ;;  %v940_v24 = vld [vmem:[#allocation2 + $0x19a] sm:$0xff]  ;;  %v1565_v27 = vmul.f32 %v1440_v26, %v745_v16  ;;  %v87_v29 = vld [vmem:[%s2523_s0 + $0xd0] sm:$0xff] }
  0x19   :  { %37 = vst.msk [vmem:[#allocation2 + $0xd8] sm:$0x1] %vm28_vm0, %v1311_v0 }
  0x1a   :  { %38 = vst.msk [vmem:[#allocation2 + $0xf0] sm:$0x1] %vm28_vm0, %v1311_v0  ;;  %v795_v38 = vadd.f32 %v763_v33, %v696_v36  ;;  %v1583_v33 = vmul.f32 %v1412_v17, %v1397_v12  ;;  %v88_v36 = vld [vmem:[%s2523_s0 + $0xd8] sm:$0xff] }
  0x1b   :  { %39 = vst.msk [vmem:[#allocation2 + $0x108] sm:$0x1] %vm28_vm0, %v1311_v0 }
  0x1c   :  { %40 = vst.msk [vmem:[#allocation2 + $0x120] sm:$0x1] %vm28_vm0, %v1311_v0  ;;  %v893_v42 = vadd.f32 %v861_v37, %v795_v38  ;;  %v1593_v37 = vmul.f32 %v1461_v34, %v940_v24  ;;  %v1598_v38 = vmul.f32 %v1440_v26, %v1416_v18  ;;  %v85_v18 = vld [vmem:[%s2523_s0 + $0xc0] sm:$0xff] }
  0x1d   :  { %2554 = vst [vmem:[#allocation9_spill] sm:$0xff] %v1475_v40 }
  0x1e   :  { %41 = vst.msk [vmem:[#allocation2 + $0x138] sm:$0x1] %vm28_vm0, %v1311_v0  ;;  %v1483_v43 = vld [vmem:[#allocation2 + $0xa8] sm:$0xff]  ;;  %v991_v47 = vadd.f32 %v959_v39, %v893_v42  ;;  %v69_v42 = vld [vmem:[%s2523_s0 + $0x40] sm:$0xff] }
  0x1f   :  { %42 = vst.msk [vmem:[#allocation2 + $0x150] sm:$0x1] %vm28_vm0, %v1311_v0  ;;  %v173_v45 = vmul.f32 %v1372_v7, %v1483_v43  ;;  %v1495_v48 = vld [vmem:[#allocation2 + $0xc0] sm:$0xff]  ;;  %v1602_v39 = vmul.f32 %v1391_v10, %v1483_v43 }
  0x20   :  { %2555 = vst [vmem:[#allocation10_spill] sm:$0xff] %v1483_v43  ;;  %v467_v50 = vmul.f32 %v1391_v10, %v1495_v48  ;;  %1193 = vmatpush.xpose.msk.msra.mxu0 %vm18_vm1, %v991_v47  ;;  %1229 = vmatpush.xpose.msk.msra.mxu2 %vm18_vm1, %v991_v47  ;;  %v728_v57 = vld [vmem:[#allocation2 + $0xd8] sm:$0xff] }
  0x21   :  { %2556 = vst [vmem:[#allocation11_spill] sm:$0xff] %v1485_v44  ;;  %v303_v49 = vadd.f32 %v271_v41, %v173_v45  ;;  %v762_v59 = vmul.f32 %v1440_v26, %v728_v57  ;;  %v1606_v41 = vmul.f32 %v1412_v17, %v1475_v40  ;;  %v70_v45 = vld [vmem:[%s2523_s0 + $0x48] sm:$0xff] }
  0x22   :  { %43 = vst.msk [vmem:[#allocation2 + $0x168] sm:$0x1] %vm28_vm0, %v1311_v0 }
  0x23   :  { %44 = vst.msk [vmem:[#allocation2 + $0x180] sm:$0x1] %vm28_vm0, %v1311_v0  ;;  %v401_v52 = vadd.f32 %v369_v46, %v303_v49  ;;  %v1619_v49 = vmul.f32 %v1451_v30, %v1418_v19 }
  0x24   :  { %45 = vst.msk [vmem:[#allocation2 + $0x29] sm:$0x1] %vm28_vm0, %v1311_v0 }
  0x25   :  { %46 = vst.msk [vmem:[#allocation2 + $0x41] sm:$0x1] %vm28_vm0, %v1311_v0  ;;  %v499_v55 = vadd.f32 %v467_v50, %v401_v52  ;;  %v1623_v50 = vmul.f32 %v1461_v34, %v1431_v23  ;;  %v1628_v52 = vmul.f32 %v1427_v22, %v1485_v44 }
  0x26   :  { %47 = vst.msk [vmem:[#allocation2 + $0x59] sm:$0x1] %vm28_vm0, %v1311_v0 }
  0x27   :  { %48 = vst.msk [vmem:[#allocation2 + $0x71] sm:$0x1] %vm28_vm0, %v1311_v0  ;;  %v597_v58 = vadd.f32 %v565_v53, %v499_v55  ;;  %v1632_v53 = vmul.f32 %v1440_v26, %v1495_v48  ;;  %v86_v55 = vld [vmem:[%s2523_s0 + $0xc8] sm:$0xff]  ;;  %v1650_v48 = vmul.f32 %v1451_v30, %v1505_v51 }
  0x28   :  { %49 = vst.msk [vmem:[#allocation2 + $0x89] sm:$0x1] %vm28_vm0, %v1311_v0 }
  0x29   :  { %50 = vst.msk [vmem:[#allocation2 + $0xa1] sm:$0x1] %vm28_vm0, %v1311_v0  ;;  %v695_v61 = vadd.f32 %v663_v56, %v597_v58  ;;  %v1654_v58 = vmul.f32 %v1461_v34, %v1513_v54 }
  0x2a   :  { %54 = vst.msk [vmem:[#allocation2 + $0x101] sm:$0x1] %vm28_vm0, %v1311_v0 }
  0x2b   :  { %55 = vst.msk [vmem:[#allocation2 + $0x119] sm:$0x1] %vm28_vm0, %v1311_v0  ;;  %v794_v1 = vadd.f32 %v762_v59, %v695_v61  ;;  %v67_v59 = vld [vmem:[%s2523_s0 + $0x30] sm:$0xff] }
  0x2c   :  { %56 = vst.msk [vmem:[#allocation2 + $0x131] sm:$0x1] %vm28_vm0, %v1311_v0 }
  0x2d   :  { %57 = vst.msk [vmem:[#allocation2 + $0x149] sm:$0x1] %vm28_vm0, %v1311_v0  ;;  %v892_v4 = vadd.f32 %v860_v62, %v794_v1 }
  0x2e   :  { %58 = vst.msk [vmem:[#allocation2 + $0x161] sm:$0x1] %vm28_vm0, %v1311_v0 }
  0x2f   :  { %59 = vst.msk [vmem:[#allocation2 + $0x179] sm:$0x1] %vm28_vm0, %v1311_v0  ;;  %v990_v14 = vadd.f32 %v958_v2, %v892_v4  ;;  %v68_v2 = vld [vmem:[%s2523_s0 + $0x38] sm:$0xff] }
  0x30   :  { %60 = vst.msk [vmem:[#allocation2 + $0x191] sm:$0x1] %vm28_vm0, %v1311_v0 }
  0x31   :  { %22 = vst.msk [vmem:[#allocation2 + $0x10] sm:$0x3] %vm21_vm2, %v1311_v0  ;;  %1194 = vmatpush.xpose.msk.msra.mxu0 %vm18_vm1, %v990_v14  ;;  %1230 = vmatpush.xpose.msk.msra.mxu2 %vm18_vm1, %v990_v14 }
  0x32   :  { %26 = vst.msk [vmem:[#allocation2 + $0x1a8] sm:$0x3] %vm21_vm2, %v1311_v0  ;;  %v842_v0 = vld [vmem:[#allocation2 + $0x199] sm:$0xff] }
  0x33   :  { %121 = vst.msk [vmem:[#allocation2 + $0x169] sm:$0xff] %vm18_vm1, %v89_v3  ;;  %v1578_v32 = vmul.f32 %v1451_v30, %v842_v0 }
  0x34   :  { %122 = vst.msk [vmem:[#allocation2 + $0x171] sm:$0xff] %vm18_vm1, %v90_v5 }
  0x35   :  { %123 = vst.msk [vmem:[#allocation2 + $0x181] sm:$0xff] %vm18_vm1, %v91_v6 }
  0x36   :  { %124 = vst.msk [vmem:[#allocation2 + $0x189] sm:$0xff] %vm18_vm1, %v92_v15 }
  0x37   :  { %103 = vst.msk [vmem:[#allocation2 + $0x91] sm:$0xff] %vm18_vm1, %v71_v21 }
  0x38   :  { %104 = vst.msk [vmem:[#allocation2 + $0x99] sm:$0xff] %vm18_vm1, %v72_v25 }
  0x39   :  { %v843_v46 = vld [vmem:[#allocation2 + $0x1a1] sm:$0xff]  ;;  %2557 = vst [vmem:[#allocation12_spill] sm:$0xff] %v1623_v50 }
  0x3a   :  { %v941_v47 = vld [vmem:[#allocation2 + $0x1a2] sm:$0xff]  ;;  %119 = vst.msk [vmem:[#allocation2 + $0x151] sm:$0xff] %vm18_vm1, %v87_v29  ;;  %v1638_v19 = vmul.f32 %v1451_v30, %v843_v46 }
  0x3b   :  { %v1641_v23 = vmul.f32 %v1461_v34, %v941_v47  ;;  %v1643_v56 = vld [vmem:[#allocation2 + $0x168] sm:$0xff]  ;;  %120 = vst.msk [vmem:[#allocation2 + $0x159] sm:$0xff] %vm18_vm1, %v88_v36  ;;  %v1659_v60 = vld [vmem:[#allocation2 + $0x170] sm:$0xff] }
  0x3c   :  { %2558 = vst [vmem:[#allocation13_spill] sm:$0xff] %v1643_v56  ;;  %v1645_v57 = vld [vmem:[#allocation2 + $0x169] sm:$0xff]  ;;  %v1661_v61 = vld [vmem:[#allocation2 + $0x171] sm:$0xff]  ;;  %v189_v63 = vmul.f32 %v1372_v7, %v1643_v56  ;;  %v1671_v54 = vmul.f32 %v1391_v10, %v1643_v56  ;;  %v190_v3 = vmul.f32 %v1372_v7, %v1659_v60  ;;  %v1689_v14 = vld [vmem:[#allocation2 + $0x180] sm:$0xff]  ;;  %v1695_v16 = vmul.f32 %v1391_v10, %v1659_v60 }
  0x3d   :  { %2559 = vst [vmem:[#allocation14_spill] sm:$0xff] %v1645_v57  ;;  %v1663_v62 = vld [vmem:[#allocation2 + $0x172] sm:$0xff]  ;;  %v287_v51 = vmul.f32 %v1378_v8, %v1645_v57  ;;  %v1675_v1 = vmul.f32 %v1412_v17, %v1645_v57  ;;  %v288_v4 = vmul.f32 %v1378_v8, %v1661_v61  ;;  %v1687_v6 = vld [vmem:[#allocation2 + $0x16a] sm:$0xff]  ;;  %v1691_v15 = vld [vmem:[#allocation2 + $0x181] sm:$0xff]  ;;  %v483_v29 = vmul.f32 %v1391_v10, %v1689_v14 }
  0x3e   :  { %2560 = vst [vmem:[#allocation15_spill] sm:$0xff] %v1650_v48  ;;  %v386_v5 = vmul.f32 %v1384_v9, %v1663_v62  ;;  %v450_v20 = vld [vmem:[#allocation2 + $0x188] sm:$0xff]  ;;  %v385_v25 = vmul.f32 %v1384_v9, %v1687_v6  ;;  %v581_v36 = vmul.f32 %v1412_v17, %v1691_v15  ;;  %v1729_v40 = vmul.f32 %v1427_v22, %v1663_v62  ;;  %v1738_v13 = vld [vmem:[#allocation2 + $0x90] sm:$0xff] }
  0x3f   :  { %2561 = vst [vmem:[#allocation16_spill] sm:$0xff] %v1654_v58  ;;  %v548_v0 = vld [vmem:[#allocation2 + $0x189] sm:$0xff]  ;;  %v319_v24 = vadd.f32 %v287_v51, %v189_v63  ;;  %v484_v46 = vmul.f32 %v1391_v10, %v450_v20  ;;  %v84_v51 = vld [vmem:[%s2523_s0 + $0xb8] sm:$0xff]  ;;  %v1752_v11 = vmul.f32 %v1440_v26, %v450_v20 }
  0x40   :  { %2562 = vst [vmem:[#allocation17_spill] sm:$0xff] %v1659_v60  ;;  %v646_v21 = vld [vmem:[#allocation2 + $0x18a] sm:$0xff]  ;;  %v1708_v57 = vld [vmem:[#allocation2 + $0x182] sm:$0xff]  ;;  %v1721_v56 = vld [vmem:[#allocation2 + $0x99] sm:$0xff]  ;;  %v1755_v58 = vmul.f32 %v1451_v30, %v548_v0 }
  0x41   :  { %2563 = vst [vmem:[#allocation18_spill] sm:$0xff] %v1661_v61  ;;  %v680_v47 = vmul.f32 %v1427_v22, %v646_v21  ;;  %v83_v63 = vld [vmem:[%s2523_s0 + $0xb0] sm:$0xff]  ;;  %v1723_v44 = vld [vmem:[#allocation2 + $0x9a] sm:$0xff]  ;;  %v1758_v48 = vmul.f32 %v1461_v34, %v646_v21 }
  0x42   :  { %2564 = vst [vmem:[#allocation19_spill] sm:$0xff] %v1663_v62  ;;  %v368_v60 = vmul.f32 %v1384_v9, %v1723_v44  ;;  %v1740_v12 = vld [vmem:[#allocation2 + $0x91] sm:$0xff] }
  0x43   :  { %101 = vst.msk [vmem:[#allocation2 + $0x79] sm:$0xff] %vm18_vm1, %v69_v42  ;;  %v320_v42 = vadd.f32 %v288_v4, %v190_v3  ;;  %v679_v3 = vmul.f32 %v1427_v22, %v1708_v57  ;;  %v1719_v4 = vld [vmem:[#allocation2 + $0x98] sm:$0xff] }
  0x44   :  { %102 = vst.msk [vmem:[#allocation2 + $0x81] sm:$0xff] %vm18_vm1, %v70_v45  ;;  %v582_v45 = vmul.f32 %v1412_v17, %v548_v0  ;;  %v1767_v20 = vld [vmem:[#allocation2 + $0x151] sm:$0xff] }
  0x45   :  { %117 = vst.msk [vmem:[#allocation2 + $0x139] sm:$0xff] %vm18_vm1, %v85_v18  ;;  %v417_v18 = vadd.f32 %v385_v25, %v319_v24  ;;  %v418_v43 = vadd.f32 %v386_v5, %v320_v42  ;;  %v172_v24 = vmul.f32 %v1372_v7, %v1719_v4  ;;  %v270_v25 = vmul.f32 %v1378_v8, %v1721_v56  ;;  %v1747_v5 = vld [vmem:[#allocation2 + $0x159] sm:$0xff] }
  0x46   :  { %118 = vst.msk [vmem:[#allocation2 + $0x141] sm:$0xff] %vm18_vm1, %v86_v55  ;;  %v580_v55 = vmul.f32 %v1412_v17, %v1661_v61  ;;  %v1742_v61 = vld [vmem:[#allocation2 + $0x92] sm:$0xff]  ;;  %v1749_v42 = vld [vmem:[#allocation2 + $0x15a] sm:$0xff] }
  0x47   :  { %2565 = vst [vmem:[#allocation20_spill] sm:$0xff] %v1723_v44  ;;  %v515_v62 = vadd.f32 %v483_v29, %v417_v18  ;;  %v516_v50 = vadd.f32 %v484_v46, %v418_v43  ;;  %v286_v18 = vmul.f32 %v1378_v8, %v1747_v5  ;;  %v1765_v44 = vld [vmem:[#allocation2 + $0x150] sm:$0xff]  ;;  %v384_v21 = vmul.f32 %v1384_v9, %v1749_v42 }
  0x48   :  { %99 = vst.msk [vmem:[#allocation2 + $0x61] sm:$0xff] %vm18_vm1, %v67_v59  ;;  %v1745_v59 = vld [vmem:[#allocation2 + $0x158] sm:$0xff]  ;;  %v171_v43 = vmul.f32 %v1372_v7, %v1738_v13  ;;  %v269_v46 = vmul.f32 %v1378_v8, %v1740_v12 }
  0x49   :  { %2566 = vst [vmem:[#allocation21_spill] sm:$0xff] %v1738_v13  ;;  %v188_v29 = vmul.f32 %v1372_v7, %v1745_v59  ;;  %v613_v0 = vadd.f32 %v581_v36, %v515_v62  ;;  %v187_v62 = vmul.f32 %v1372_v7, %v1765_v44  ;;  %v285_v36 = vmul.f32 %v1378_v8, %v1767_v20 }
  0x4a   :  { %2567 = vst [vmem:[#allocation22_spill] sm:$0xff] %v1740_v12 }
  0x4b   :  { %100 = vst.msk [vmem:[#allocation2 + $0x69] sm:$0xff] %vm18_vm1, %v68_v2  ;;  %v302_v2 = vadd.f32 %v270_v25, %v172_v24  ;;  %v614_v24 = vadd.f32 %v582_v45, %v516_v50 }
  0x4c   :  { %2568 = vst [vmem:[#allocation23_spill] sm:$0xff] %v1745_v59  ;;  %v367_v59 = vmul.f32 %v1384_v9, %v1742_v61 }
  0x4d   :  { %2569 = vst [vmem:[#allocation24_spill] sm:$0xff] %v1747_v5  ;;  %v400_v25 = vadd.f32 %v368_v60, %v302_v2  ;;  %v318_v5 = vadd.f32 %v286_v18, %v188_v29  ;;  %v712_v13 = vadd.f32 %v680_v47, %v614_v24  ;;  %v317_v2 = vadd.f32 %v285_v36, %v187_v62  ;;  %v1795_v47 = vld [vmem:[#allocation2 + $0x80] sm:$0xff] }
  0x4e   :  { %2570 = vst [vmem:[#allocation25_spill] sm:$0xff] %v1749_v42 }
  0x4f   :  { %2571 = vst [vmem:[#allocation26_spill] sm:$0xff] %v1758_v48  ;;  %v711_v48 = vadd.f32 %v679_v3, %v613_v0  ;;  %v498_v42 = vadd.f32 %v1569_v28, %v400_v25  ;;  %v416_v12 = vadd.f32 %v384_v21, %v318_v5  ;;  %v677_v3 = vmul.f32 %v1427_v22, %v1687_v6  ;;  %v1814_v21 = vld [vmem:[#allocation2 + $0x82] sm:$0xff] }
  0x50   :  { %115 = vst.msk [vmem:[#allocation2 + $0x121] sm:$0xff] %vm18_vm1, %v83_v63  ;;  %v1776_v63 = vld [vmem:[#allocation2 + $0x152] sm:$0xff]  ;;  %v811_v29 = vadd.f32 %v1565_v27, %v712_v13  ;;  %v776_v28 = vmul.f32 %v1440_v26, %v1689_v14  ;;  %v464_v25 = vmul.f32 %v1391_v10, %v1719_v4 }
  0x51   :  { %116 = vst.msk [vmem:[#allocation2 + $0x129] sm:$0xff] %vm18_vm1, %v84_v51  ;;  %v301_v51 = vadd.f32 %v269_v46, %v171_v43  ;;  %v383_v50 = vmul.f32 %v1384_v9, %v1776_v63  ;;  %v810_v60 = vadd.f32 %v1575_v31, %v711_v48  ;;  %v596_v18 = vadd.f32 %v1583_v33, %v498_v42  ;;  %v65_v31 = vld [vmem:[%s2523_s0 + $0x20] sm:$0xff]  ;;  %v66_v48 = vld [vmem:[%s2523_s0 + $0x28] sm:$0xff] }
  0x52   :  { %v514_v0 = vadd.f32 %v1695_v16, %v416_v12  ;;  %v874_v12 = vmul.f32 %v1451_v30, %v1691_v15  ;;  %v1807_v33 = vld [vmem:[#allocation2 + $0x81] sm:$0xff]  ;;  %97 = vst.msk [vmem:[#allocation2 + $0x49] sm:$0xff] %vm18_vm1, %v65_v31  ;;  %v909_v14 = vadd.f32 %v1638_v19, %v811_v29  ;;  %v972_v42 = vmul.f32 %v1461_v34, %v1708_v57 }
  0x53   :  { %v399_v45 = vadd.f32 %v367_v59, %v301_v51  ;;  %v908_v59 = vadd.f32 %v1578_v32, %v810_v60  ;;  %v415_v27 = vadd.f32 %v383_v50, %v317_v2  ;;  %v694_v16 = vadd.f32 %v1587_v35, %v596_v18  ;;  %98 = vst.msk [vmem:[#allocation2 + $0x51] sm:$0xff] %vm18_vm1, %v66_v48  ;;  %v81_v32 = vld [vmem:[%s2523_s0 + $0xa0] sm:$0xff] }
  0x54   :  { %v612_v5 = vadd.f32 %v580_v55, %v514_v0  ;;  %v170_v57 = vmul.f32 %v1372_v7, %v1795_v47  ;;  %113 = vst.msk [vmem:[#allocation2 + $0x109] sm:$0xff] %vm18_vm1, %v81_v32  ;;  %v1007_v55 = vadd.f32 %v1641_v23, %v909_v14  ;;  %v268_v24 = vmul.f32 %v1378_v8, %v1807_v33  ;;  %v1841_v23 = vld [vmem:[#allocation2 + $0x140] sm:$0xff]  ;;  %v2574_v0 = vld [vmem:[#allocation15_spill] sm:$0xff] }
  0x55   :  { %v497_v13 = vadd.f32 %v1602_v39, %v399_v45  ;;  %v82_v39 = vld [vmem:[%s2523_s0 + $0xa8] sm:$0xff]  ;;  %v1006_v19 = vadd.f32 %v1593_v37, %v908_v59  ;;  %v513_v15 = vadd.f32 %v1671_v54, %v415_v27  ;;  %v793_v43 = vadd.f32 %v1598_v38, %v694_v16  ;;  %v2572_v60 = vld [vmem:[#allocation20_spill] sm:$0xff]  ;;  %v2576_v27 = vld [vmem:[#allocation23_spill] sm:$0xff] }
  0x56   :  { %v710_v46 = vadd.f32 %v1729_v40, %v612_v5  ;;  %114 = vst.msk [vmem:[#allocation2 + $0x111] sm:$0xff] %vm18_vm1, %v82_v39  ;;  %v366_v54 = vmul.f32 %v1384_v9, %v1814_v21  ;;  %1211 = vmatpush.xpose.msk.msra.mxu1 %vm18_vm1, %v1007_v55  ;;  %1245 = vmatpush.xpose.msk.msra.mxu3 %vm18_vm1, %v1007_v55  ;;  %v2573_v2 = vld [vmem:[#allocation12_spill] sm:$0xff]  ;;  %v2575_v59 = vld [vmem:[#allocation26_spill] sm:$0xff]  ;;  %v1873_v39 = vld [vmem:[#allocation2 + $0x78] sm:$0xff] }
  0x57   :  { %v595_v35 = vadd.f32 %v1606_v41, %v497_v13  ;;  %v611_v41 = vadd.f32 %v1675_v1, %v513_v15  ;;  %v891_v40 = vadd.f32 %v1619_v49, %v793_v43  ;;  %v300_v51 = vadd.f32 %v268_v24, %v170_v57  ;;  %v1849_v1 = vld [vmem:[#allocation2 + $0x142] sm:$0xff]  ;;  %v1879_v55 = vld [vmem:[#allocation2 + $0x7a] sm:$0xff] }
  0x58   :  { %v809_v38 = vadd.f32 %v1752_v11, %v710_v46  ;;  %v562_v50 = vmul.f32 %v1412_v17, %v1721_v56  ;;  %v660_v45 = vmul.f32 %v1427_v22, %v2572_v60  ;;  %v186_v11 = vmul.f32 %v1372_v7, %v1841_v23  ;;  %v2579_v46 = vld [vmem:[#allocation7_spill] sm:$0xff] }
  0x59   :  { %v693_v37 = vadd.f32 %v1628_v52, %v595_v35  ;;  %v1847_v52 = vld [vmem:[#allocation2 + $0x141] sm:$0xff]  ;;  %v709_v36 = vadd.f32 %v677_v3, %v611_v41  ;;  %v989_v29 = vadd.f32 %v2573_v2, %v891_v40  ;;  %v398_v18 = vadd.f32 %v366_v54, %v300_v51  ;;  %v1875_v35 = vld [vmem:[#allocation2 + $0x79] sm:$0xff] }
  0x5a   :  { %v907_v49 = vadd.f32 %v1755_v58, %v809_v38  ;;  %v382_v3 = vmul.f32 %v1384_v9, %v1849_v1  ;;  %1212 = vmatpush.xpose.msk.msra.mxu1 %vm18_vm1, %v1006_v19  ;;  %1246 = vmatpush.xpose.msk.msra.mxu3 %vm18_vm1, %v1006_v19  ;;  %v480_v14 = vmul.f32 %v1391_v10, %v2576_v27  ;;  %v2578_v19 = vld [vmem:[#allocation6_spill] sm:$0xff]  ;;  %v2580_v41 = vld [vmem:[#allocation24_spill] sm:$0xff]  ;;  %v2581_v38 = vld [vmem:[#allocation25_spill] sm:$0xff] }
  0x5b   :  { %v792_v62 = vadd.f32 %v1632_v53, %v693_v37  ;;  %v808_v48 = vadd.f32 %v776_v28, %v709_v36  ;;  %v284_v53 = vmul.f32 %v1378_v8, %v1847_v52  ;;  %v496_v58 = vadd.f32 %v464_v25, %v398_v18  ;;  %1195 = vmatpush.xpose.msk.msra.mxu0 %vm18_vm1, %v989_v29  ;;  %v2577_v28 = vld [vmem:[#allocation16_spill] sm:$0xff]  ;;  %v1897_v36 = vld [vmem:[#allocation2 + $0x138] sm:$0xff] }
  0x5c   :  { %v1005_v13 = vadd.f32 %v2575_v59, %v907_v49  ;;  %1231 = vmatpush.xpose.msk.msra.mxu2 %vm18_vm1, %v989_v29  ;;  %v759_v57 = vmul.f32 %v1440_v26, %v2578_v19  ;;  %v857_v24 = vmul.f32 %v1451_v30, %v2579_v46  ;;  %v578_v54 = vmul.f32 %v1412_v17, %v2580_v41  ;;  %v2583_v49 = vld [vmem:[#allocation21_spill] sm:$0xff]  ;;  %v2586_v19 = vld [vmem:[#allocation18_spill] sm:$0xff] }
  0x5d   :  { %v890_v31 = vadd.f32 %v2574_v0, %v792_v62  ;;  %v906_v5 = vadd.f32 %v874_v12, %v808_v48  ;;  %v316_v32 = vadd.f32 %v284_v53, %v186_v11  ;;  %v594_v15 = vadd.f32 %v562_v50, %v496_v58  ;;  %v1903_v11 = vld [vmem:[#allocation2 + $0x139] sm:$0xff]  ;;  %v2584_v48 = vld [vmem:[#allocation17_spill] sm:$0xff] }
  0x5e   :  { %1213 = vmatpush.xpose.msk.msra.mxu1 %vm18_vm1, %v1005_v13  ;;  %1247 = vmatpush.xpose.msk.msra.mxu3 %vm18_vm1, %v1005_v13  ;;  %v169_v25 = vmul.f32 %v1372_v7, %v1873_v39  ;;  %v267_v40 = vmul.f32 %v1378_v8, %v1875_v35  ;;  %v676_v51 = vmul.f32 %v1427_v22, %v2581_v38  ;;  %v1905_v0 = vld [vmem:[#allocation2 + $0x13a] sm:$0xff]  ;;  %v63_v13 = vld [vmem:[%s2523_s0 + $0x10] sm:$0xff] }
  0x5f   :  { %v988_v16 = vadd.f32 %v2577_v28, %v890_v31  ;;  %v1004_v43 = vadd.f32 %v972_v42, %v906_v5  ;;  %v414_v37 = vadd.f32 %v382_v3, %v316_v32  ;;  %v692_v12 = vadd.f32 %v660_v45, %v594_v15  ;;  %v2582_v45 = vld [vmem:[#allocation8_spill] sm:$0xff]  ;;  %v2585_v3 = vld [vmem:[#allocation22_spill] sm:$0xff]  ;;  %v64_v58 = vld [vmem:[%s2523_s0 + $0x18] sm:$0xff]  ;;  %95 = vst.msk [vmem:[#allocation2 + $0x31] sm:$0xff] %vm18_vm1, %v63_v13 }
  0x60   :  { %v365_v62 = vmul.f32 %v1384_v9, %v1879_v55  ;;  %v955_v2 = vmul.f32 %v1461_v34, %v2582_v45  ;;  %v299_v29 = vadd.f32 %v267_v40, %v169_v25  ;;  %v463_v18 = vmul.f32 %v1391_v10, %v2583_v49  ;;  %v79_v5 = vld [vmem:[%s2523_s0 + $0x90] sm:$0xff]  ;;  %v80_v32 = vld [vmem:[%s2523_s0 + $0x98] sm:$0xff]  ;;  %96 = vst.msk [vmem:[#allocation2 + $0x39] sm:$0xff] %vm18_vm1, %v64_v58 }
  0x61   :  { %1196 = vmatpush.xpose.msk.msra.mxu0 %vm18_vm1, %v988_v16  ;;  %1232 = vmatpush.xpose.msk.msra.mxu2 %vm18_vm1, %v988_v16  ;;  %v512_v42 = vadd.f32 %v480_v14, %v414_v37  ;;  %v791_v50 = vadd.f32 %v759_v57, %v692_v12  ;;  %v775_v53 = vmul.f32 %v1440_v26, %v2584_v48 }
  0x62   :  { %v561_v59 = vmul.f32 %v1412_v17, %v2585_v3  ;;  %1214 = vmatpush.xpose.msk.msra.mxu1 %vm18_vm1, %v1004_v43  ;;  %1248 = vmatpush.xpose.msk.msra.mxu3 %vm18_vm1, %v1004_v43  ;;  %v397_v28 = vadd.f32 %v365_v62, %v299_v29  ;;  %v185_v16 = vmul.f32 %v1372_v7, %v1897_v36 }
  0x63   :  { %v610_v31 = vadd.f32 %v578_v54, %v512_v42  ;;  %v889_v14 = vadd.f32 %v857_v24, %v791_v50  ;;  %v873_v57 = vmul.f32 %v1451_v30, %v2586_v19  ;;  %v283_v43 = vmul.f32 %v1378_v8, %v1903_v11  ;;  %v1934_v24 = vld [vmem:[#allocation2 + $0x68] sm:$0xff]  ;;  %v2587_v54 = vld [vmem:[#allocation19_spill] sm:$0xff]  ;;  %111 = vst.msk [vmem:[#allocation2 + $0xf1] sm:$0xff] %vm18_vm1, %v79_v5  ;;  %v2588_v50 = vld [vmem:[#allocation10_spill] sm:$0xff] }
  0x64   :  { %v381_v46 = vmul.f32 %v1384_v9, %v1905_v0  ;;  %v971_v12 = vmul.f32 %v1461_v34, %v2587_v54  ;;  %v495_v25 = vadd.f32 %v463_v18, %v397_v28  ;;  %v659_v40 = vmul.f32 %v1427_v22, %v1742_v61  ;;  %v1941_v42 = vld [vmem:[#allocation2 + $0x69] sm:$0xff]  ;;  %112 = vst.msk [vmem:[#allocation2 + $0xf9] sm:$0xff] %vm18_vm1, %v80_v32  ;;  %v2590_v32 = vld [vmem:[#allocation11_spill] sm:$0xff] }
  0x65   :  { %v708_v15 = vadd.f32 %v676_v51, %v610_v31  ;;  %v987_v37 = vadd.f32 %v955_v2, %v889_v14  ;;  %v1943_v51 = vld [vmem:[#allocation2 + $0x6a] sm:$0xff]  ;;  %v758_v45 = vmul.f32 %v1440_v26, %v2588_v50  ;;  %v315_v29 = vadd.f32 %v283_v43, %v185_v16 }
  0x66   :  { %v479_v2 = vmul.f32 %v1391_v10, %v1765_v44  ;;  %v593_v18 = vadd.f32 %v561_v59, %v495_v25  ;;  %v577_v31 = vmul.f32 %v1412_v17, %v1767_v20  ;;  %v168_v48 = vmul.f32 %v1372_v7, %v1934_v24  ;;  %v1961_v28 = vld [vmem:[#allocation2 + $0x128] sm:$0xff] }
  0x67   :  { %v807_v62 = vadd.f32 %v775_v53, %v708_v15  ;;  %1197 = vmatpush.xpose.msk.msra.mxu0 %vm18_vm1, %v987_v37  ;;  %1233 = vmatpush.xpose.msk.msra.mxu2 %vm18_vm1, %v987_v37  ;;  %v413_v13 = vadd.f32 %v381_v46, %v315_v29  ;;  %v266_v58 = vmul.f32 %v1378_v8, %v1941_v42  ;;  %v2589_v5 = vld [vmem:[#allocation9_spill] sm:$0xff] }
  0x68   :  { %v364_v14 = vmul.f32 %v1384_v9, %v1943_v51  ;;  %v691_v16 = vadd.f32 %v659_v40, %v593_v18  ;;  %v856_v59 = vmul.f32 %v1451_v30, %v2589_v5  ;;  %v954_v15 = vmul.f32 %v1461_v34, %v2590_v32  ;;  %v1973_v25 = vld [vmem:[#allocation2 + $0x12a] sm:$0xff]  ;;  %v1991_v5 = vld [vmem:[#allocation2 + $0x60] sm:$0xff] }
  0x69   :  { %v905_v53 = vadd.f32 %v873_v57, %v807_v62  ;;  %v675_v19 = vmul.f32 %v1427_v22, %v1776_v63  ;;  %v1969_v57 = vld [vmem:[#allocation2 + $0x129] sm:$0xff]  ;;  %v511_v46 = vadd.f32 %v479_v2, %v413_v13  ;;  %v298_v37 = vadd.f32 %v266_v58, %v168_v48 }
  0x6a   :  { %v462_v54 = vmul.f32 %v1391_v10, %v1795_v47  ;;  %v790_v40 = vadd.f32 %v758_v45, %v691_v16  ;;  %v2591_v62 = vld [vmem:[#allocation13_spill] sm:$0xff]  ;;  %v560_v29 = vmul.f32 %v1412_v17, %v1807_v33  ;;  %v184_v18 = vmul.f32 %v1372_v7, %v1961_v28  ;;  %v2592_v45 = vld [vmem:[#allocation14_spill] sm:$0xff] }
  0x6b   :  { %v1003_v43 = vadd.f32 %v971_v12, %v905_v53  ;;  %v774_v50 = vmul.f32 %v1440_v26, %v2591_v62  ;;  %v609_v12 = vadd.f32 %v577_v31, %v511_v46  ;;  %v396_v2 = vadd.f32 %v364_v14, %v298_v37  ;;  %v1995_v14 = vld [vmem:[#allocation2 + $0x61] sm:$0xff] }
  0x6c   :  { %v282_v48 = vmul.f32 %v1378_v8, %v1969_v57  ;;  %v888_v53 = vadd.f32 %v856_v59, %v790_v40  ;;  %v872_v13 = vmul.f32 %v1451_v30, %v2592_v45  ;;  %v658_v58 = vmul.f32 %v1427_v22, %v1814_v21  ;;  %v1997_v59 = vld [vmem:[#allocation2 + $0x62] sm:$0xff] }
  0x6d   :  { %1215 = vmatpush.xpose.msk.msra.mxu1 %vm18_vm1, %v1003_v43  ;;  %1249 = vmatpush.xpose.msk.msra.mxu3 %vm18_vm1, %v1003_v43  ;;  %v380_v16 = vmul.f32 %v1384_v9, %v1973_v25  ;;  %v707_v32 = vadd.f32 %v675_v19, %v609_v12  ;;  %v494_v62 = vadd.f32 %v462_v54, %v396_v2 }
  0x6e   :  { %v314_v43 = vadd.f32 %v282_v48, %v184_v18  ;;  %v478_v31 = vmul.f32 %v1391_v10, %v1841_v23  ;;  %v986_v46 = vadd.f32 %v954_v15, %v888_v53  ;;  %v970_v37 = vmul.f32 %v1461_v34, %v1687_v6  ;;  %v2017_v53 = vld [vmem:[#allocation2 + $0x120] sm:$0xff] }
  0x6f   :  { %v757_v40 = vmul.f32 %v1440_v26, %v1719_v4  ;;  %v576_v45 = vmul.f32 %v1412_v17, %v1847_v52  ;;  %v806_v19 = vadd.f32 %v774_v50, %v707_v32  ;;  %v592_v54 = vadd.f32 %v560_v29, %v494_v62  ;;  %v2021_v32 = vld [vmem:[#allocation2 + $0x122] sm:$0xff] }
  0x70   :  { %v412_v18 = vadd.f32 %v380_v16, %v314_v43  ;;  %v167_v12 = vmul.f32 %v1372_v7, %v1991_v5  ;;  %1198 = vmatpush.xpose.msk.msra.mxu0 %vm18_vm1, %v986_v46  ;;  %1234 = vmatpush.xpose.msk.msra.mxu2 %vm18_vm1, %v986_v46  ;;  %v855_v15 = vmul.f32 %v1451_v30, %v1721_v56  ;;  %v2019_v16 = vld [vmem:[#allocation2 + $0x121] sm:$0xff] }
  0x71   :  { %v265_v6 = vmul.f32 %v1378_v8, %v1995_v14  ;;  %v363_v4 = vmul.f32 %v1384_v9, %v1997_v59  ;;  %v904_v2 = vadd.f32 %v872_v13, %v806_v19  ;;  %v690_v50 = vadd.f32 %v658_v58, %v592_v54  ;;  %v61_v54 = vld [vmem:[%s2523_s0] sm:$0xff] }
  0x72   :  { %v510_v29 = vadd.f32 %v478_v31, %v412_v18  ;;  %v674_v48 = vmul.f32 %v1427_v22, %v1849_v1  ;;  %v953_v56 = vmul.f32 %v1461_v34, %v2572_v60  ;;  %v773_v62 = vmul.f32 %v1440_v26, %v2576_v27  ;;  %v62_v60 = vld [vmem:[%s2523_s0 + $0x8] sm:$0xff]  ;;  %93 = vst.msk [vmem:[#allocation2 + $0x19] sm:$0xff] %vm18_vm1, %v61_v54  ;;  %v2055_v54 = vld [vmem:[#allocation2 + $0x51] sm:$0xff]  ;;  %s1181_s0 = sshll.u32 %s2527_s4, 4  ;;  %s1182_s0 = int_to_ptr.hbm [resolvable:$true] %s1181_s0 }
  0x73   :  { %v297_v43 = vadd.f32 %v265_v6, %v167_v12  ;;  %v461_v13 = vmul.f32 %v1391_v10, %v1873_v39  ;;  %v1002_v58 = vadd.f32 %v970_v37, %v904_v2  ;;  %v789_v31 = vadd.f32 %v757_v40, %v690_v50  ;;  %94 = vst.msk [vmem:[#allocation2 + $0x21] sm:$0xff] %vm18_vm1, %v62_v60 }
  0x74   :  { %v608_v46 = vadd.f32 %v576_v45, %v510_v29  ;;  %v559_v19 = vmul.f32 %v1412_v17, %v1875_v35  ;;  %v183_v27 = vmul.f32 %v1372_v7, %v2017_v53  ;;  %v281_v37 = vmul.f32 %v1378_v8, %v2019_v16 }
  0x75   :  { %v395_v18 = vadd.f32 %v363_v4, %v297_v43  ;;  %v379_v40 = vmul.f32 %v1384_v9, %v2021_v32  ;;  %1216 = vmatpush.xpose.msk.msra.mxu1 %vm18_vm1, %v1002_v58  ;;  %1250 = vmatpush.xpose.msk.msra.mxu3 %vm18_vm1, %v1002_v58  ;;  %v887_v45 = vadd.f32 %v855_v15, %v789_v31  ;;  %v2048_v4 = vld [vmem:[#allocation2 + $0x50] sm:$0xff] }
  0x76   :  { %v706_v12 = vadd.f32 %v674_v48, %v608_v46  ;;  %v871_v6 = vmul.f32 %v1451_v30, %v2580_v41  ;;  %v657_v50 = vmul.f32 %v1427_v22, %v1879_v55  ;;  %v313_v29 = vadd.f32 %v281_v37, %v183_v27  ;;  %v2057_v58 = vld [vmem:[#allocation2 + $0x52] sm:$0xff] }
  0x77   :  { %v493_v2 = vadd.f32 %v461_v13, %v395_v18  ;;  %v477_v43 = vmul.f32 %v1391_v10, %v1897_v36  ;;  %v985_v15 = vadd.f32 %v953_v56, %v887_v45  ;;  %v969_v41 = vmul.f32 %v1461_v34, %v2581_v38  ;;  %v2079_v45 = vld [vmem:[#allocation2 + $0x111] sm:$0xff] }
  0x78   :  { %v805_v48 = vadd.f32 %v773_v62, %v706_v12  ;;  %v756_v31 = vmul.f32 %v1440_v26, %v2583_v49  ;;  %v411_v46 = vadd.f32 %v379_v40, %v313_v29  ;;  %v575_v60 = vmul.f32 %v1412_v17, %v1903_v11  ;;  %v2077_v40 = vld [vmem:[#allocation2 + $0x110] sm:$0xff] }
  0x79   :  { %v591_v13 = vadd.f32 %v559_v19, %v493_v2  ;;  %v166_v18 = vmul.f32 %v1372_v7, %v2048_v4  ;;  %1199 = vmatpush.xpose.msk.msra.mxu0 %vm18_vm1, %v985_v15  ;;  %1235 = vmatpush.xpose.msk.msra.mxu2 %vm18_vm1, %v985_v15  ;;  %v264_v62 = vmul.f32 %v1378_v8, %v2055_v54 }
  0x7a   :  { %v903_v56 = vadd.f32 %v871_v6, %v805_v48  ;;  %v362_v38 = vmul.f32 %v1384_v9, %v2057_v58  ;;  %v854_v19 = vmul.f32 %v1451_v30, %v2585_v3  ;;  %v509_v27 = vadd.f32 %v477_v43, %v411_v46 }
  0x7b   :  { %v689_v49 = vadd.f32 %v657_v50, %v591_v13  ;;  %v673_v37 = vmul.f32 %v1427_v22, %v1905_v0  ;;  %v952_v6 = vmul.f32 %v1461_v34, %v1742_v61  ;;  %v296_v2 = vadd.f32 %v264_v62, %v166_v18  ;;  %v2085_v50 = vld [vmem:[#allocation2 + $0x112] sm:$0xff]  ;;  %v2101_v18 = vld [vmem:[#allocation2 + $0x48] sm:$0xff] }
  0x7c   :  { %v1001_v12 = vadd.f32 %v969_v41, %v903_v56  ;;  %v460_v29 = vmul.f32 %v1391_v10, %v1934_v24  ;;  %v607_v3 = vadd.f32 %v575_v60, %v509_v27  ;;  %v772_v43 = vmul.f32 %v1440_v26, %v1765_v44  ;;  %v2107_v27 = vld [vmem:[#allocation2 + $0x49] sm:$0xff] }
  0x7d   :  { %v788_v15 = vadd.f32 %v756_v31, %v689_v49  ;;  %v558_v48 = vmul.f32 %v1412_v17, %v1941_v42  ;;  %v394_v41 = vadd.f32 %v362_v38, %v296_v2  ;;  %v182_v61 = vmul.f32 %v1372_v7, %v2077_v40 }
  0x7e   :  { %1217 = vmatpush.xpose.msk.msra.mxu1 %vm18_vm1, %v1001_v12  ;;  %1251 = vmatpush.xpose.msk.msra.mxu3 %vm18_vm1, %v1001_v12  ;;  %v280_v13 = vmul.f32 %v1378_v8, %v2079_v45  ;;  %v705_v31 = vadd.f32 %v673_v37, %v607_v3  ;;  %v870_v60 = vmul.f32 %v1451_v30, %v1767_v20 }
  0x7f   :  { %v886_v46 = vadd.f32 %v854_v19, %v788_v15  ;;  %v378_v44 = vmul.f32 %v1384_v9, %v2085_v50  ;;  %v492_v56 = vadd.f32 %v460_v29, %v394_v41  ;;  %v656_v62 = vmul.f32 %v1427_v22, %v1943_v51  ;;  %v2109_v19 = vld [vmem:[#allocation2 + $0x4a] sm:$0xff] }
  0x80   :  { %v312_v38 = vadd.f32 %v280_v13, %v182_v61  ;;  %v476_v49 = vmul.f32 %v1391_v10, %v1961_v28  ;;  %v804_v12 = vadd.f32 %v772_v43, %v705_v31  ;;  %v968_v20 = vmul.f32 %v1461_v34, %v1776_v63 }
  0x81   :  { %v984_v37 = vadd.f32 %v952_v6, %v886_v46  ;;  %v755_v2 = vmul.f32 %v1440_v26, %v1795_v47  ;;  %v590_v29 = vadd.f32 %v558_v48, %v492_v56  ;;  %v574_v3 = vmul.f32 %v1412_v17, %v1969_v57  ;;  %v2131_v46 = vld [vmem:[#allocation2 + $0x109] sm:$0xff] }
  0x82   :  { %v410_v15 = vadd.f32 %v378_v44, %v312_v38  ;;  %v165_v41 = vmul.f32 %v1372_v7, %v2101_v18  ;;  %v902_v6 = vadd.f32 %v870_v60, %v804_v12  ;;  %v263_v43 = vmul.f32 %v1378_v8, %v2107_v27  ;;  %v2129_v7 = vld [vmem:[#allocation2 + $0x108] sm:$0xff] }
  0x83   :  { %1200 = vmatpush.xpose.msk.msra.mxu0 %vm18_vm1, %v984_v37  ;;  %1236 = vmatpush.xpose.msk.msra.mxu2 %vm18_vm1, %v984_v37  ;;  %v361_v63 = vmul.f32 %v1384_v9, %v2109_v19  ;;  %v688_v47 = vadd.f32 %v656_v62, %v590_v29  ;;  %v853_v48 = vmul.f32 %v1451_v30, %v1807_v33  ;;  %v2137_v44 = vld [vmem:[#allocation2 + $0x10a] sm:$0xff] }
  0x84   :  { %v508_v61 = vadd.f32 %v476_v49, %v410_v15  ;;  %v672_v13 = vmul.f32 %v1427_v22, %v1973_v25  ;;  %v1000_v31 = vadd.f32 %v968_v20, %v902_v6  ;;  %v951_v60 = vmul.f32 %v1461_v34, %v1814_v21  ;;  %v2148_v21 = vld [vmem:[%s2524_s1] ss:$0 sm:$0xff]  ;;  %v2168_v15 = vld [vmem:[#allocation2 + $0x38] sm:$0xff] }
  0x85   :  { %v295_v8 = vadd.f32 %v263_v43, %v165_v41  ;;  %v459_v9 = vmul.f32 %v1391_v10, %v1991_v5  ;;  %v787_v56 = vadd.f32 %v755_v2, %v688_v47  ;;  %v771_v62 = vmul.f32 %v1440_v26, %v1841_v23  ;;  %v2155_v23 = vld [vmem:[%s2524_s1 + $0x1] ss:$0 sm:$0xff]  ;;  %v2164_v2 = vld [vmem:[%s2524_s1 + $0x2] ss:$0 sm:$0xff]  ;;  %v2175_v43 = vld [vmem:[%s2524_s1 + $0x3] ss:$0 sm:$0xff] }
  0x86   :  { %v606_v33 = vadd.f32 %v574_v3, %v508_v61  ;;  %v557_v38 = vmul.f32 %v1412_v17, %v1995_v14  ;;  %1218 = vmatpush.xpose.msk.msra.mxu1 %vm18_vm1, %v1000_v31  ;;  %1252 = vmatpush.xpose.msk.msra.mxu3 %vm18_vm1, %v1000_v31  ;;  %v181_v10 = vmul.f32 %v2148_v21, %v2129_v7 }
  0x87   :  { %v393_v49 = vadd.f32 %v361_v63, %v295_v8  ;;  %v279_v17 = vmul.f32 %v2155_v23, %v2131_v46  ;;  %v885_v37 = vadd.f32 %v853_v48, %v787_v56  ;;  %v869_v20 = vmul.f32 %v1451_v30, %v1847_v52  ;;  %v2179_v52 = vld [vmem:[#allocation2 + $0x39] sm:$0xff]  ;;  %v2190_v8 = vld [vmem:[%s2524_s1 + $0x4] ss:$0 sm:$0xff]  ;;  %v2205_v56 = vld [vmem:[%s2524_s1 + $0x7] ss:$0 sm:$0xff] }
  0x88   :  { %v704_v12 = vadd.f32 %v672_v13, %v606_v33  ;;  %v377_v29 = vmul.f32 %v2164_v2, %v2137_v44  ;;  %v655_v41 = vmul.f32 %v1427_v22, %v1997_v59  ;;  %v475_v30 = vmul.f32 %v2175_v43, %v2017_v53  ;;  %v2181_v63 = vld [vmem:[#allocation2 + $0x3a] sm:$0xff] }
  0x89   :  { %v491_v3 = vadd.f32 %v459_v9, %v393_v49  ;;  %v311_v6 = vadd.f32 %v279_v17, %v181_v10  ;;  %v983_v47 = vadd.f32 %v951_v60, %v885_v37  ;;  %v967_v61 = vmul.f32 %v1461_v34, %v1849_v1  ;;  %v2216_v10 = vld [vmem:[#allocation2 + $0xf8] sm:$0xff] }
  0x8a   :  { %v803_v48 = vadd.f32 %v771_v62, %v704_v12  ;;  %v754_v22 = vmul.f32 %v1440_v26, %v1873_v39  ;;  %v573_v9 = vmul.f32 %v2190_v8, %v2019_v16  ;;  %v164_v60 = vmul.f32 %v2148_v21, %v2168_v15  ;;  %v2218_v17 = vld [vmem:[#allocation2 + $0xf9] sm:$0xff]  ;;  %v2223_v12 = vld [vmem:[%s2524_s1 + $0x8] ss:$0 sm:$0xff] }
  0x8b   :  { %v589_v13 = vadd.f32 %v557_v38, %v491_v3  ;;  %v409_v31 = vadd.f32 %v377_v29, %v311_v6  ;;  %1201 = vmatpush.xpose.msk.msra.mxu0 %vm18_vm1, %v983_v47  ;;  %1237 = vmatpush.xpose.msk.msra.mxu2 %vm18_vm1, %v983_v47  ;;  %v262_v26 = vmul.f32 %v2155_v23, %v2179_v52  ;;  %v2212_v38 = vld [vmem:[%s2524_s1 + $0x5] ss:$0 sm:$0xff]  ;;  %v2229_v3 = vld [vmem:[#allocation2 + $0xfa] sm:$0xff] }
  0x8c   :  { %v901_v34 = vadd.f32 %v869_v20, %v803_v48  ;;  %v360_v1 = vmul.f32 %v2164_v2, %v2181_v63  ;;  %v852_v33 = vmul.f32 %v2205_v56, %v1875_v35  ;;  %v671_v49 = vmul.f32 %v2212_v38, %v2021_v32 }
  0x8d   :  { %v687_v39 = vadd.f32 %v655_v41, %v589_v13  ;;  %v507_v62 = vadd.f32 %v475_v30, %v409_v31  ;;  %v950_v35 = vmul.f32 %v2223_v12, %v1879_v55  ;;  %v294_v20 = vadd.f32 %v262_v26, %v164_v60  ;;  %v2234_v30 = vld [vmem:[%s2524_s1 + $0x6] ss:$0 sm:$0xff]  ;;  %v2250_v60 = vld [vmem:[#allocation2 + $0x30] sm:$0xff] }
  0x8e   :  { %v999_v37 = vadd.f32 %v967_v61, %v901_v34  ;;  %v458_v29 = vmul.f32 %v2175_v43, %v2048_v4  ;;  %v770_v47 = vmul.f32 %v2234_v30, %v1897_v36  ;;  %v556_v48 = vmul.f32 %v2190_v8, %v2055_v54 }
  0x8f   :  { %v786_v41 = vadd.f32 %v754_v22, %v687_v39  ;;  %v605_v6 = vadd.f32 %v573_v9, %v507_v62  ;;  %v392_v55 = vadd.f32 %v360_v1, %v294_v20  ;;  %v180_v61 = vmul.f32 %v2148_v21, %v2216_v10  ;;  %v2256_v62 = vld [vmem:[#allocation2 + $0x31] sm:$0xff] }
  0x90   :  { %1219 = vmatpush.xpose.msk.msra.mxu1 %vm18_vm1, %v999_v37  ;;  %1253 = vmatpush.xpose.msk.msra.mxu3 %vm18_vm1, %v999_v37  ;;  %v278_v22 = vmul.f32 %v2155_v23, %v2218_v17  ;;  %v868_v9 = vmul.f32 %v2205_v56, %v1903_v11  ;;  %v376_v36 = vmul.f32 %v2164_v2, %v2229_v3 }
  0x91   :  { %v884_v13 = vadd.f32 %v852_v33, %v786_v41  ;;  %v703_v31 = vadd.f32 %v671_v49, %v605_v6  ;;  %v490_v34 = vadd.f32 %v458_v29, %v392_v55  ;;  %v654_v26 = vmul.f32 %v2212_v38, %v2057_v58  ;;  %v2258_v33 = vld [vmem:[#allocation2 + $0x32] sm:$0xff] }
  0x92   :  { %v310_v1 = vadd.f32 %v278_v22, %v180_v61  ;;  %v474_v39 = vmul.f32 %v2175_v43, %v2077_v40  ;;  %v966_v11 = vmul.f32 %v2223_v12, %v1905_v0  ;;  %v753_v20 = vmul.f32 %v2234_v30, %v1934_v24 }
  0x93   :  { %v982_v49 = vadd.f32 %v950_v35, %v884_v13  ;;  %v802_v37 = vadd.f32 %v770_v47, %v703_v31  ;;  %v588_v29 = vadd.f32 %v556_v48, %v490_v34  ;;  %v572_v6 = vmul.f32 %v2190_v8, %v2079_v45  ;;  %v2278_v13 = vld [vmem:[#allocation2 + $0xf0] sm:$0xff] }
  0x94   :  { %v408_v41 = vadd.f32 %v376_v36, %v310_v1  ;;  %v163_v55 = vmul.f32 %v2148_v21, %v2250_v60  ;;  %v261_v47 = vmul.f32 %v2155_v23, %v2256_v62  ;;  %v359_v0 = vmul.f32 %v2164_v2, %v2258_v33  ;;  %v2280_v31 = vld [vmem:[#allocation2 + $0xf1] sm:$0xff] }
  0x95   :  { %1202 = vmatpush.xpose.msk.msra.mxu0 %vm18_vm1, %v982_v49  ;;  %1238 = vmatpush.xpose.msk.msra.mxu2 %vm18_vm1, %v982_v49  ;;  %v900_v35 = vadd.f32 %v868_v9, %v802_v37  ;;  %v686_v24 = vadd.f32 %v654_v26, %v588_v29  ;;  %v851_v48 = vmul.f32 %v2205_v56, %v1941_v42  ;;  %v2286_v26 = vld [vmem:[#allocation2 + $0xf2] sm:$0xff] }
  0x96   :  { %v506_v61 = vadd.f32 %v474_v39, %v408_v41  ;;  %v670_v22 = vmul.f32 %v2212_v38, %v2085_v50  ;;  %v949_v9 = vmul.f32 %v2223_v12, %v1943_v51  ;;  %v293_v34 = vadd.f32 %v261_v47, %v163_v55  ;;  %v2302_v55 = vld [vmem:[#allocation2 + $0x20] sm:$0xff] }
  0x97   :  { %v998_v36 = vadd.f32 %v966_v11, %v900_v35  ;;  %v457_v1 = vmul.f32 %v2175_v43, %v2101_v18  ;;  %v785_v49 = vadd.f32 %v753_v20, %v686_v24  ;;  %v769_v39 = vmul.f32 %v2234_v30, %v1961_v28 }
  0x98   :  { %v604_v42 = vadd.f32 %v572_v6, %v506_v61  ;;  %v555_v37 = vmul.f32 %v2190_v8, %v2107_v27  ;;  %v391_v11 = vadd.f32 %v359_v0, %v293_v34  ;;  %v179_v51 = vmul.f32 %v2148_v21, %v2278_v13  ;;  %v2308_v61 = vld [vmem:[#allocation2 + $0x21] sm:$0xff] }
  0x99   :  { %1220 = vmatpush.xpose.msk.msra.mxu1 %vm18_vm1, %v998_v36  ;;  %1254 = vmatpush.xpose.msk.msra.mxu3 %vm18_vm1, %v998_v36  ;;  %v277_v29 = vmul.f32 %v2155_v23, %v2280_v31  ;;  %v883_v41 = vadd.f32 %v851_v48, %v785_v49  ;;  %v867_v6 = vmul.f32 %v2205_v56, %v1969_v57  ;;  %v2310_v48 = vld [vmem:[#allocation2 + $0x22] sm:$0xff] }
  0x9a   :  { %v702_v20 = vadd.f32 %v670_v22, %v604_v42  ;;  %v375_v28 = vmul.f32 %v2164_v2, %v2286_v26  ;;  %v489_v35 = vadd.f32 %v457_v1, %v391_v11  ;;  %v653_v47 = vmul.f32 %v2212_v38, %v2109_v19 }
  0x9b   :  { %v309_v0 = vadd.f32 %v277_v29, %v179_v51  ;;  %v473_v24 = vmul.f32 %v2175_v43, %v2129_v7  ;;  %v981_v22 = vadd.f32 %v949_v9, %v883_v41  ;;  %v965_v57 = vmul.f32 %v2223_v12, %v1973_v25  ;;  %v2330_v41 = vld [vmem:[#allocation2 + $0xe0] sm:$0xff] }
  0x9c   :  { %v801_v36 = vadd.f32 %v769_v39, %v702_v20  ;;  %v752_v34 = vmul.f32 %v2234_v30, %v1991_v5  ;;  %v587_v1 = vadd.f32 %v555_v37, %v489_v35  ;;  %v571_v42 = vmul.f32 %v2190_v8, %v2131_v46  ;;  %v2332_v20 = vld [vmem:[#allocation2 + $0xe1] sm:$0xff] }
  0x9d   :  { %v407_v49 = vadd.f32 %v375_v28, %v309_v0  ;;  %v162_v11 = vmul.f32 %v2148_v21, %v2302_v55  ;;  %1203 = vmatpush.xpose.msk.msra.mxu0 %vm18_vm1, %v981_v22  ;;  %1239 = vmatpush.xpose.msk.msra.mxu2 %vm18_vm1, %v981_v22  ;;  %v260_v39 = vmul.f32 %v2155_v23, %v2308_v61 }
  0x9e   :  { %v899_v9 = vadd.f32 %v867_v6, %v801_v36  ;;  %v358_v25 = vmul.f32 %v2164_v2, %v2310_v48  ;;  %v685_v5 = vadd.f32 %v653_v47, %v587_v1  ;;  %v850_v37 = vmul.f32 %v2205_v56, %v1995_v14  ;;  %v2338_v47 = vld [vmem:[#allocation2 + $0xe2] sm:$0xff] }
  0x9f   :  { %v505_v51 = vadd.f32 %v473_v24, %v407_v49  ;;  %v669_v29 = vmul.f32 %v2212_v38, %v2137_v44  ;;  %v948_v6 = vmul.f32 %v2223_v12, %v1997_v59  ;;  %v292_v35 = vadd.f32 %v260_v39, %v162_v11  ;;  %v2354_v11 = vld [vmem:[#allocation2 + $0x18] sm:$0xff] }
  0xa0   :  { %v997_v28 = vadd.f32 %v965_v57, %v899_v9  ;;  %v456_v0 = vmul.f32 %v2175_v43, %v2168_v15  ;;  %v784_v22 = vadd.f32 %v752_v34, %v685_v5  ;;  %v768_v24 = vmul.f32 %v2234_v30, %v2017_v53 }
  0xa1   :  { %v603_v14 = vadd.f32 %v571_v42, %v505_v51  ;;  %v554_v36 = vmul.f32 %v2190_v8, %v2179_v52  ;;  %v390_v57 = vadd.f32 %v358_v25, %v292_v35  ;;  %v178_v59 = vmul.f32 %v2148_v21, %v2330_v41  ;;  %v2360_v51 = vld [vmem:[#allocation2 + $0x19] sm:$0xff] }
  0xa2   :  { %1221 = vmatpush.xpose.msk.msra.mxu1 %vm18_vm1, %v997_v28  ;;  %1255 = vmatpush.xpose.msk.msra.mxu3 %vm18_vm1, %v997_v28  ;;  %v276_v1 = vmul.f32 %v2155_v23, %v2332_v20  ;;  %v882_v49 = vadd.f32 %v850_v37, %v784_v22  ;;  %v866_v42 = vmul.f32 %v2205_v56, %v2019_v16  ;;  %v2362_v37 = vld [vmem:[#allocation2 + $0x1a] sm:$0xff] }
  0xa3   :  { %v701_v34 = vadd.f32 %v669_v29, %v603_v14  ;;  %v374_v53 = vmul.f32 %v2164_v2, %v2338_v47  ;;  %v488_v9 = vadd.f32 %v456_v0, %v390_v57  ;;  %v652_v39 = vmul.f32 %v2212_v38, %v2181_v63 }
  0xa4   :  { %v308_v25 = vadd.f32 %v276_v1, %v178_v59  ;;  %v472_v5 = vmul.f32 %v2175_v43, %v2216_v10  ;;  %v980_v29 = vadd.f32 %v948_v6, %v882_v49  ;;  %v964_v16 = vmul.f32 %v2223_v12, %v2021_v32  ;;  %v2382_v49 = vld [vmem:[#allocation2 + $0xd8] sm:$0xff] }
  0xa5   :  { %v800_v28 = vadd.f32 %v768_v24, %v701_v34  ;;  %v751_v35 = vmul.f32 %v2234_v30, %v2048_v4  ;;  %v586_v0 = vadd.f32 %v554_v36, %v488_v9  ;;  %v570_v14 = vmul.f32 %v2190_v8, %v2218_v17  ;;  %v2384_v34 = vld [vmem:[#allocation2 + $0xd9] sm:$0xff] }
  0xa6   :  { %v406_v22 = vadd.f32 %v374_v53, %v308_v25  ;;  %v161_v57 = vmul.f32 %v2148_v21, %v2354_v11  ;;  %1204 = vmatpush.xpose.msk.msra.mxu0 %vm18_vm1, %v980_v29  ;;  %1240 = vmatpush.xpose.msk.msra.mxu2 %vm18_vm1, %v980_v29  ;;  %v259_v24 = vmul.f32 %v2155_v23, %v2360_v51 }
  0xa7   :  { %v898_v6 = vadd.f32 %v866_v42, %v800_v28  ;;  %v357_v32 = vmul.f32 %v2164_v2, %v2362_v37  ;;  %v684_v4 = vadd.f32 %v652_v39, %v586_v0  ;;  %v849_v36 = vmul.f32 %v2205_v56, %v2055_v54  ;;  %v2390_v39 = vld [vmem:[#allocation2 + $0xda] sm:$0xff] }
  0xa8   :  { %v504_v59 = vadd.f32 %v472_v5, %v406_v22  ;;  %v668_v1 = vmul.f32 %v2212_v38, %v2229_v3  ;;  %v947_v42 = vmul.f32 %v2223_v12, %v2057_v58  ;;  %v291_v9 = vadd.f32 %v259_v24, %v161_v57  ;;  %v126_v57 = vld [vmem:[#allocation2 + $0x8] sm:$0xff] }
  0xa9   :  { %v996_v53 = vadd.f32 %v964_v16, %v898_v6  ;;  %v455_v25 = vmul.f32 %v2175_v43, %v2250_v60  ;;  %v783_v29 = vadd.f32 %v751_v35, %v684_v4  ;;  %v767_v5 = vmul.f32 %v2234_v30, %v2077_v40 }
  0xaa   :  { %v602_v54 = vadd.f32 %v570_v14, %v504_v59  ;;  %v553_v28 = vmul.f32 %v2190_v8, %v2256_v62  ;;  %v389_v16 = vadd.f32 %v357_v32, %v291_v9  ;;  %v177_v58 = vmul.f32 %v2148_v21, %v2382_v49  ;;  %v224_v59 = vld [vmem:[#allocation2 + $0x9] sm:$0xff] }
  0xab   :  { %1222 = vmatpush.xpose.msk.msra.mxu1 %vm18_vm1, %v996_v53  ;;  %1256 = vmatpush.xpose.msk.msra.mxu3 %vm18_vm1, %v996_v53  ;;  %v275_v0 = vmul.f32 %v2155_v23, %v2384_v34  ;;  %v881_v22 = vadd.f32 %v849_v36, %v783_v29  ;;  %v865_v14 = vmul.f32 %v2205_v56, %v2079_v45  ;;  %v322_v53 = vld [vmem:[#allocation2 + $0xa] sm:$0xff] }
  0xac   :  { %v700_v35 = vadd.f32 %v668_v1, %v602_v54  ;;  %v373_v40 = vmul.f32 %v2164_v2, %v2390_v39  ;;  %v487_v6 = vadd.f32 %v455_v25, %v389_v16  ;;  %v651_v24 = vmul.f32 %v2212_v38, %v2258_v33 }
  0xad   :  { %v307_v32 = vadd.f32 %v275_v0, %v177_v58  ;;  %v471_v4 = vmul.f32 %v2175_v43, %v2278_v13  ;;  %v979_v9 = vadd.f32 %v947_v42, %v881_v22  ;;  %v963_v1 = vmul.f32 %v2223_v12, %v2085_v50  ;;  %v142_v22 = vld [vmem:[#allocation2 + $0xc8] sm:$0xff] }
  0xae   :  { %v799_v36 = vadd.f32 %v767_v5, %v700_v35  ;;  %v750_v45 = vmul.f32 %v2234_v30, %v2101_v18  ;;  %v585_v29 = vadd.f32 %v553_v28, %v487_v6  ;;  %v569_v25 = vmul.f32 %v2190_v8, %v2280_v31  ;;  %v240_v35 = vld [vmem:[#allocation2 + $0xc9] sm:$0xff] }
  0xaf   :  { %v405_v54 = vadd.f32 %v373_v40, %v307_v32  ;;  %v160_v16 = vmul.f32 %v2148_v21, %v126_v57  ;;  %1205 = vmatpush.xpose.msk.msra.mxu0 %vm18_vm1, %v979_v9  ;;  %1241 = vmatpush.xpose.msk.msra.mxu2 %vm18_vm1, %v979_v9  ;;  %v258_v42 = vmul.f32 %v2155_v23, %v224_v59  ;;  %v1312_v40 = vmov 0  }
  0xb0   :  { %v897_v58 = vadd.f32 %v865_v14, %v799_v36  ;;  %v356_v5 = vmul.f32 %v2164_v2, %v322_v53  ;;  %v683_v50 = vadd.f32 %v651_v24, %v585_v29  ;;  %v848_v18 = vmul.f32 %v2205_v56, %v2107_v27  ;;  %1266 = vset.pattern.permute.xlu0 %v1312_v40  ;;  %v338_v24 = vld [vmem:[#allocation2 + $0xca] sm:$0xff]  ;;  %v1010_v27 = vld [vmem:[%s2526_s3] sm:$0xff] }
  0xb1   :  { %v503_v28 = vadd.f32 %v471_v4, %v405_v54  ;;  %v667_v0 = vmul.f32 %v2212_v38, %v2286_v26  ;;  %v946_v14 = vmul.f32 %v2223_v12, %v2109_v19  ;;  %v290_v6 = vadd.f32 %v258_v42, %v160_v16  ;;  %1014 = vperm.xlu0 %1266, %v1010_v27   ;;  %v125_v54 = vld [vmem:[#allocation2] sm:$0xff] }
  0xb2   :  { %v995_v57 = vadd.f32 %v963_v1, %v897_v58  ;;  %v454_v32 = vmul.f32 %v2175_v43, %v2302_v55  ;;  %v782_v4 = vadd.f32 %v750_v45, %v683_v50  ;;  %v766_v53 = vmul.f32 %v2234_v30, %v2129_v7  ;;  %v223_v42 = vld [vmem:[#allocation2 + $0x1] sm:$0xff] }
  0xb3   :  { %v601_v59 = vadd.f32 %v569_v25, %v503_v28  ;;  %v552_v9 = vmul.f32 %v2190_v8, %v2308_v61  ;;  %v388_v19 = vadd.f32 %v356_v5, %v290_v6  ;;  %v176_v55 = vmul.f32 %v2148_v21, %v142_v22  ;;  %v321_v5 = vld [vmem:[#allocation2 + $0x2] sm:$0xff] }
  0xb4   :  { %1223 = vmatpush.xpose.msk.msra.mxu1 %vm18_vm1, %v995_v57  ;;  %1257 = vmatpush.xpose.msk.msra.mxu3 %vm18_vm1, %v995_v57  ;;  %v274_v36 = vmul.f32 %v2155_v23, %v240_v35  ;;  %v880_v1 = vadd.f32 %v848_v18, %v782_v4  ;;  %v864_v45 = vmul.f32 %v2205_v56, %v2131_v46 }
  0xb5   :  { %v699_v29 = vadd.f32 %v667_v0, %v601_v59  ;;  %v372_v7 = vmul.f32 %v2164_v2, %v338_v24  ;;  %v486_v25 = vadd.f32 %v454_v32, %v388_v19  ;;  %v650_v61 = vmul.f32 %v2212_v38, %v2310_v48  ;;  %v141_v32 = vld [vmem:[#allocation2 + $0xc0] sm:$0xff] }
  0xb6   :  { %v306_v16 = vadd.f32 %v274_v36, %v176_v55  ;;  %v470_v58 = vmul.f32 %v2175_v43, %v2330_v41  ;;  %v978_v50 = vadd.f32 %v946_v14, %v880_v1  ;;  %v962_v18 = vmul.f32 %v2223_v12, %v2137_v44  ;;  %v1011_v41 = vld [vmem:[%s2526_s3 + $0x8] sm:$0xff] }
  0xb7   :  { %v798_v28 = vadd.f32 %v766_v53, %v699_v29  ;;  %v749_v46 = vmul.f32 %v2234_v30, %v2168_v15  ;;  %v584_v0 = vadd.f32 %v552_v9, %v486_v25  ;;  %v568_v35 = vmul.f32 %v2190_v8, %v2332_v20  ;;  %v239_v24 = vld [vmem:[#allocation2 + $0xc1] sm:$0xff] }
  0xb8   :  { %v404_v22 = vadd.f32 %v372_v7, %v306_v16  ;;  %v159_v48 = vmul.f32 %v2148_v21, %v125_v54  ;;  %1206 = vmatpush.xpose.msk.msra.mxu0 %vm18_vm1, %v978_v50  ;;  %1242 = vmatpush.xpose.msk.msra.mxu2 %vm18_vm1, %v978_v50  ;;  %v257_v44 = vmul.f32 %v2155_v23, %v223_v42  ;;  %v337_v9 = vld [vmem:[#allocation2 + $0xc2] sm:$0xff] }
  0xb9   :  { %v896_v40 = vadd.f32 %v864_v45, %v798_v28  ;;  %v355_v15 = vmul.f32 %v2164_v2, %v321_v5  ;;  %v682_v57 = vadd.f32 %v650_v61, %v584_v0  ;;  %v847_v14 = vmul.f32 %v2205_v56, %v2179_v52  ;;  %1019 = vperm.xlu0 %1266, %v1011_v41  }
  0xba   :  { %v502_v20 = vadd.f32 %v470_v58, %v404_v22  ;;  %v666_v6 = vmul.f32 %v2212_v38, %v2338_v47  ;;  %v945_v4 = vmul.f32 %v2223_v12, %v2181_v63  ;;  %v289_v59 = vadd.f32 %v257_v44, %v159_v48 }
  0xbb   :  { %v994_v27 = vadd.f32 %v962_v18, %v896_v40  ;;  %v453_v53 = vmul.f32 %v2175_v43, %v2354_v11  ;;  %v781_v19 = vadd.f32 %v749_v46, %v682_v57  ;;  %v765_v52 = vmul.f32 %v2234_v30, %v2216_v10 }
  0xbc   :  { %v600_v55 = vadd.f32 %v568_v35, %v502_v20  ;;  %v551_v47 = vmul.f32 %v2190_v8, %v2360_v51  ;;  %v387_v36 = vadd.f32 %v355_v15, %v289_v59  ;;  %v175_v63 = vmul.f32 %v2148_v21, %v141_v32 }
  0xbd   :  { %1224 = vmatpush.xpose.msk.msra.mxu1 %vm18_vm1, %v994_v27  ;;  %1258 = vmatpush.xpose.msk.msra.mxu3 %vm18_vm1, %v994_v27  ;;  %v273_v1 = vmul.f32 %v2155_v23, %v239_v24  ;;  %v879_v11 = vadd.f32 %v847_v14, %v781_v19  ;;  %v863_v45 = vmul.f32 %v2205_v56, %v2218_v17 }
  0xbe   :  { %v698_v29 = vadd.f32 %v666_v6, %v600_v55  ;;  %v371_v7 = vmul.f32 %v2164_v2, %v337_v9  ;;  %v485_v10 = vadd.f32 %v453_v53, %v387_v36  ;;  %v649_v51 = vmul.f32 %v2212_v38, %v2362_v37 }
  0xbf   :  { %v305_v54 = vadd.f32 %v273_v1, %v175_v63  ;;  %v469_v25 = vmul.f32 %v2175_v43, %v2382_v49  ;;  %v977_v61 = vadd.f32 %v945_v4, %v879_v11  ;;  %v961_v21 = vmul.f32 %v2223_v12, %v2229_v3 }
  0xc0   :  { %v797_v16 = vadd.f32 %v765_v52, %v698_v29  ;;  %v583_v23 = vadd.f32 %v551_v47, %v485_v10  ;;  %v748_v58 = vmul.f32 %v2234_v30, %v2250_v60  ;;  %v567_v2 = vmul.f32 %v2190_v8, %v2384_v34 }
  0xc1   :  { %v403_v17 = vadd.f32 %v371_v7, %v305_v54  ;;  %1207 = vmatpush.xpose.msk.msra.mxu0 %vm18_vm1, %v977_v61  ;;  %1243 = vmatpush.xpose.msk.msra.mxu2 %vm18_vm1, %v977_v61  ;;  %v846_v43 = vmul.f32 %v2205_v56, %v2256_v62  ;;  %v665_v3 = vmul.f32 %v2212_v38, %v2390_v39 }
  0xc2   :  { %v895_v37 = vadd.f32 %v863_v45, %v797_v16  ;;  %v681_v42 = vadd.f32 %v649_v51, %v583_v23  ;;  %v944_v60 = vmul.f32 %v2223_v12, %v2258_v33  ;;  %v764_v8 = vmul.f32 %v2234_v30, %v2278_v13  ;;  %v1008_v30 = vld [vmem:[%s2525_s2] sm:$0xff]  ;;  %v1009_v13 = vld [vmem:[%s2525_s2 + $0x8] sm:$0xff]  ;;  %s1313_s2 = smov [#allocation3]  }
  0xc3   :  { %v501_v49 = vadd.f32 %v469_v25, %v403_v17  ;;  %v862_v62 = vmul.f32 %v2205_v56, %v2280_v31  ;;  %v960_v39 = vmul.f32 %v2223_v12, %v2286_v26  ;;  %s1179_s16 = sshll.u32 %s1313_s2, 4  ;;  %s1180_s16 = int_to_ptr.vmem [resolvable:$true] %s1179_s16 }
  0xc4   :  { %v993_v5 = vadd.f32 %v961_v21, %v895_v37  ;;  %v780_v50 = vadd.f32 %v748_v58, %v681_v42 }
  0xc5   :  { %v599_v28 = vadd.f32 %v567_v2, %v501_v49 }
  0xc6   :  { %1225 = vmatpush.xpose.msk.msra.mxu1 %vm18_vm1, %v993_v5  ;;  %1259 = vmatpush.xpose.msk.msra.mxu3 %vm18_vm1, %v993_v5  ;;  %v878_v34 = vadd.f32 %v846_v43, %v780_v50 }
  0xc7   :  { %v697_v18 = vadd.f32 %v665_v3, %v599_v28 }
  0xc8   :  { %v976_v46 = vadd.f32 %v944_v60, %v878_v34 }
  0xc9   :  { %v796_v38 = vadd.f32 %v764_v8, %v697_v18 }
  0xca   :  { %1208 = vmatpush.xpose.msk.msra.mxu0 %vm18_vm1, %v976_v46  ;;  %1244 = vmatpush.xpose.msk.msra.mxu2 %vm18_vm1, %v976_v46 }
  0xcb   :  { %v894_v33 = vadd.f32 %v862_v62, %v796_v38 }
  0xcd   :  { %v992_v0 = vadd.f32 %v960_v39, %v894_v33  ;;  %1209 = vmatmul.msk.f32.vlgmr.msra.gmra.mxu0 %vm18_vm1, %v1008_v30  ;;  %1210 = vmatmul.msk.f32.vlgmr.msra.gmra.mxu2 %vm18_vm1, %v1009_v13 }
  0xcf   :  { %1226 = vmatpush.xpose.msk.msra.mxu1 %vm18_vm1, %v992_v0  ;;  %1260 = vmatpush.xpose.msk.msra.mxu3 %vm18_vm1, %v992_v0 }
  0xd2   :  { %1227 = vmatmul.msk.f32.vlgmr.msra.gmra.mxu1 %vm18_vm1, %v1008_v30  ;;  %1228 = vmatmul.msk.f32.vlgmr.msra.gmra.mxu3 %vm18_vm1, %v1009_v13 }
 0x123   :  { %v1015_v56 = vpop.permute.xlu0 %1014 }
 0x12b   :  { %v1020_v35 = vpop.permute.xlu0 %1019 }
 0x14a   :  { %v1141_v12 = vpop.f32.mrf.mxu0 }
 0x14b   :  { %v1142_v31 = vadd.f32 %v1141_v12, %v1015_v56 }
 0x14d   :  { %1170 = vst [vmem:[#allocation3] sm:$0xff] %v1142_v31 }
 0x14f   :  { %v1164_v26 = vpop.f32.mrf.mxu1 }
 0x150   :  { %v1165_v22 = vadd.f32 %v1164_v26, %v1015_v56  ;;  %v1144_v48 = vpop.f32.mrf.mxu2 }
 0x151   :  { %v1145_v41 = vadd.f32 %v1144_v48, %v1020_v35 }
 0x152   :  { %1171 = vst [vmem:[#allocation3 + $0x8] sm:$0xff] %v1165_v22 }
 0x153   :  { %1173 = vst [vmem:[#allocation3 + $0x10] sm:$0xff] %v1145_v41 }
 0x155   :  { %v1167_v40 = vpop.f32.mrf.mxu3 }
 0x156   :  { %v1168_v44 = vadd.f32 %v1167_v40, %v1020_v35 }
 0x158   :  { %1174 = vst [vmem:[#allocation3 + $0x18] sm:$0xff] %v1168_v44 }
 0x159   :  { %1187 = dma.vmem_to_hbm [thread:$0]  %s1180_s16, 512, %s1182_s0, [#allocation4], %s1314_s19, %s1314_s19, %s1315_s20  }
 0x15a   :  { %1309 = dma.done.wait [#allocation4], 512  }
 0x15b   :  { %1310 = vsyncadd [#allocation4], 4294966784 }
 0x15c   :  { %1192 = vsyncpa [#allocation4], 1 }

</bundles_post_ra>
